<compile_context>
chip_gen: v7x
topology: tpu7x:2x2x1
jax: 0.10.0
libtpu: 0.0.40
codegen_flags: <defaults>
</compile_context>

<pallas_src>
import jax
import jax.numpy as jnp
from jax.experimental import pallas as pl
from jax.experimental.pallas import tpu as pltpu


_MAX_BLOCK_B = 4096   # rows/step; >=512 already reaches ~85% of HBM roofline


def _round_up(x, m):
    return ((x + m - 1) // m) * m


def _pad2d(a, rows, cols):
    r, c = a.shape
    if r == rows and c == cols:
        return a
    return jnp.pad(a, ((0, rows - r), (0, cols - c)))


def _hw_config():
    """Return (vmem_sizing_budget, vmem_limit_bytes, min_grid_steps)."""
    vmem = None
    try:  # hardware introspection only -- never masks kernel errors
        vmem = int(pltpu.get_tpu_info().vmem_capacity_bytes)
    except Exception:
        vmem = None
    if vmem is None or vmem <= 0:
        return 24 << 20, 40 << 20, 2            # unknown: safe on every gen
    if vmem >= (100 << 20):                     # v4/v5e/v5p/v6e: 128 MiB, 1 TC
        return 96 << 20, 100 << 20, 1
    if vmem >= (48 << 20):                      # v7x class: 64 MiB/TC, 2 TCs
        return 32 << 20, 48 << 20, 2
    return 10 << 20, 14 << 20, 1                # tiny-VMEM legacy parts


def _vmem_bytes_estimate(bb, dim, dim_p, w_bytes, out_bytes):
    """Rough VMEM footprint (inputs/outputs double-buffered, weights too)."""
    x_bufs = 2 * bb * dim * 4                   # f32 input tiles
    en2_bufs = 2 * bb * 128 * out_bytes
    de2_bufs = 2 * bb * dim_p * out_bytes
    w_total = (dim * 128 + 2 * 128 * 128 + 128 * dim_p) * w_bytes
    b_total = (3 * 128 + dim_p) * 4
    interm = 2 * bb * 128 * 4                   # h1/h3 f32 live values
    return x_bufs + en2_bufs + de2_bufs + 2 * (w_total + b_total) + interm


def ae_kernel(x_ref,
              w1_ref, b1_ref,
              w2_ref, b2_ref,
              w3_ref, b3_ref,
              w4_ref, b4_ref,
              en2_ref, de2_ref):
    """Fused 4-layer MLP forward for one (block_b, dim) batch tile.

    Weights are stored pre-transposed as (in, out) so y = x @ W + b matches
    PyTorch's x @ W.T + b.  x arrives in f32 and is cast to the matmul operand
    dtype in-vreg; all matmuls accumulate in f32; bias add + ReLU stay in f32.
    """
    cdt = w1_ref.dtype  # matmul operand dtype (f32 or bf16)

    x = x_ref[...].astype(cdt)
    # en1: (bb, dim) @ (dim, 128)
    h1 = jnp.dot(x, w1_ref[...], preferred_element_type=jnp.float32) + b1_ref[...]
    h1 = jnp.maximum(h1, 0.0)
    # en2 (bottleneck, zero-padded 64 -> 128 lanes for lane-dense stores)
    h2 = jnp.dot(h1.astype(cdt), w2_ref[...],
                 preferred_element_type=jnp.float32) + b2_ref[...]
    h2 = jnp.maximum(h2, 0.0)
    en2_ref[...] = h2.astype(en2_ref.dtype)
    # de1
    h3 = jnp.dot(h2.astype(cdt), w3_ref[...],
                 preferred_element_type=jnp.float32) + b3_ref[...]
    h3 = jnp.maximum(h3, 0.0)
    # de2 (feature axis zero-padded to dim_p for lane-dense stores)
    h4 = jnp.dot(h3.astype(cdt), w4_ref[...],
                 preferred_element_type=jnp.float32) + b4_ref[...]
    h4 = jnp.maximum(h4, 0.0)
    de2_ref[...] = h4.astype(de2_ref.dtype)


def _build_call(bb, dim, dim_p, b_p, out_dtype, vmem_limit):
    def x_map(i):
        return (i, 0)

    def const_map(i):
        return (0, 0)

    return pl.pallas_call(
        ae_kernel,
        out_shape=(
            jax.ShapeDtypeStruct((b_p, 128), out_dtype),    # en2 (padded 64->128)
            jax.ShapeDtypeStruct((b_p, dim_p), out_dtype),  # de2 (padded dim->dim_p)
        ),
        grid_spec=pltpu.PrefetchScalarGridSpec(
            num_scalar_prefetch=0,
            grid=(b_p // bb,),
            in_specs=[
                pl.BlockSpec((bb, dim), x_map),
                pl.BlockSpec((dim, 128), const_map), pl.BlockSpec((1, 128), const_map),
                pl.BlockSpec((128, 128), const_map), pl.BlockSpec((1, 128), const_map),
                pl.BlockSpec((128, 128), const_map), pl.BlockSpec((1, 128), const_map),
                pl.BlockSpec((128, dim_p), const_map), pl.BlockSpec((1, dim_p), const_map),
            ],
            out_specs=[
                pl.BlockSpec((bb, 128), x_map),
                pl.BlockSpec((bb, dim_p), x_map),
            ],
        ),
        compiler_params=pltpu.CompilerParams(
            dimension_semantics=("parallel",),
            vmem_limit_bytes=vmem_limit,
        ),
    )


def ae_forward(x, params, *, block_b=None, use_bf16=True, out_dtype=jnp.float32):
    """Fused autoencoder forward. Returns (en2, de2) like the torch module.

    params: w1..w4 stored pre-transposed as (in, out), b1..b4 as (1, out).
    use_bf16: bf16 matmul operands (f32 accumulation) -- right on all current
      MXUs. Pass False for bit-level f32 parity with the PyTorch reference.
    out_dtype: dtype of the stored en2/de2 (f32 default; bf16 halves output
      DMA/VMEM for large dim, most useful on v7x).
    """
    B, dim = x.shape
    dim_p = _round_up(dim, 128)                 # lane-dense OUTPUT feature axis only
    w_dtype = jnp.bfloat16 if use_bf16 else jnp.float32
    w_bytes = 2 if use_bf16 else 4
    out_bytes = jnp.dtype(out_dtype).itemsize

    budget, vmem_limit, min_steps = _hw_config()

    # ---- batch tile: the largest that fits the per-generation VMEM budget ---
    start = B if block_b is None else int(block_b)
    bb = max(8, _round_up(min(start, _MAX_BLOCK_B, B), 8))
    while bb > 8 and _vmem_bytes_estimate(bb, dim, dim_p, w_bytes, out_bytes) > budget:
        bb = max(8, _round_up(bb // 2, 8))
    # Only on 2-TC parts: give the "parallel" axis at least one step per core.
    while bb > 8 and pl.cdiv(B, bb) < min_steps:
        bb = max(8, _round_up(bb // 2, 8))
    b_p = _round_up(B, bb)

    # ---- operands: x stays f32 / unpadded lanes; cast happens in-kernel -----
    xf = x if x.dtype == jnp.float32 else x.astype(jnp.float32)  # torch .type(float32)
    x_p = xf if b_p == B else jnp.pad(xf, ((0, b_p - B), (0, 0)))

    w1 = params["w1"].astype(w_dtype)                       # (dim, 128)
    b1 = params["b1"].astype(jnp.float32)                   # (1, 128)
    w2 = _pad2d(params["w2"].astype(w_dtype), 128, 128)     # (128, 64) -> (128, 128)
    b2 = _pad2d(params["b2"].astype(jnp.float32), 1, 128)
    w3 = _pad2d(params["w3"].astype(w_dtype), 128, 128)     # (64, 128) -> (128, 128)
    b3 = params["b3"].astype(jnp.float32)
    w4 = _pad2d(params["w4"].astype(w_dtype), 128, dim_p)   # (128, dim) -> (128, dim_p)
    b4 = _pad2d(params["b4"].astype(jnp.float32), 1, dim_p)

    en2_p, de2_p = _build_call(bb, dim, dim_p, b_p, out_dtype, vmem_limit)(
        x_p, w1, b1, w2, b2, w3, b3, w4, b4)

    # Slice padding back off: en2 is (B, 64), de2 is (B, dim).
    return en2_p[:B, :64], de2_p[:B, :dim]


def init_params(key, dim):
    """Deterministic synthetic init (shapes match torch.nn.Linear params)."""
    ks = jax.random.split(key, 8)

    def lin(kw, kb, fan_in, fan_out):
        bound = 1.0 / jnp.sqrt(fan_in)
        # Stored already transposed to (in, out); bias as (1, out) for 2D VMEM.
        w = jax.random.uniform(kw, (fan_in, fan_out), jnp.float32, -bound, bound)
        b = jax.random.uniform(kb, (1, fan_out), jnp.float32, -bound, bound)
        return w, b

    w1, b1 = lin(ks[0], ks[1], dim, 128)
    w2, b2 = lin(ks[2], ks[3], 128, 64)
    w3, b3 = lin(ks[4], ks[5], 64, 128)
    w4, b4 = lin(ks[6], ks[7], 128, dim)
    return {"w1": w1, "b1": b1, "w2": w2, "b2": b2,
            "w3": w3, "b3": b3, "w4": w4, "b4": b4}


def ae_forward_ref(x, p, compute_dtype=jnp.float32):
    """Plain-JAX reference mirroring the PyTorch forward."""
    h = x.astype(jnp.float32)

    def layer(h, w, b):
        y = jnp.dot(h.astype(compute_dtype), w.astype(compute_dtype),
                    preferred_element_type=jnp.float32) + b
        return jnp.maximum(y, 0.0)

    h1 = layer(h, p["w1"], p["b1"])
    h2 = layer(h1, p["w2"], p["b2"])
    h3 = layer(h2, p["w3"], p["b3"])
    h4 = layer(h3, p["w4"], p["b4"])
    return h2, h4


if __name__ == "__main__":
    key = jax.random.PRNGKey(0)
    k_params, k_x = jax.random.split(key)

    B, dim = 512, 32
    params = init_params(k_params, dim)
    x = jax.random.normal(k_x, (B, dim), jnp.float32)

    # f32 operand path (bit-level parity with the f32 PyTorch reference).
    en2_f32, de2_f32 = ae_forward(x, params, use_bf16=False)
    # bf16 operand path (default perf path on v5e / v6e / v7x MXUs).
    en2_bf, de2_bf = ae_forward(x, params, use_bf16=True)
    jax.block_until_ready((en2_f32, de2_f32, en2_bf, de2_bf))

    assert en2_f32.shape == (B, 64) and de2_f32.shape == (B, dim)
    assert en2_bf.shape == (B, 64) and de2_bf.shape == (B, dim)

    en2_ref, de2_ref = ae_forward_ref(x, params, compute_dtype=jnp.float32)
    assert jnp.allclose(en2_f32, en2_ref, atol=1e-5, rtol=1e-5)
    assert jnp.allclose(de2_f32, de2_ref, atol=1e-5, rtol=1e-5)

    en2_rbf, de2_rbf = ae_forward_ref(x, params, compute_dtype=jnp.bfloat16)
    assert jnp.allclose(en2_bf, en2_rbf, atol=2e-3, rtol=2e-3)
    assert jnp.allclose(de2_bf, de2_rbf, atol=2e-3, rtol=2e-3)

    print("KERNEL_OK")
</pallas_src>

<mosaic_0001>
module attributes {stable_mosaic.version = 11 : i64} {
  func.func @ae_kernel(%arg0: i32, %arg1: memref<256x32xf32, #tpu.memory_space<vmem>>, %arg2: memref<32x128xf32, #tpu.memory_space<vmem>>, %arg3: memref<1x128xf32, #tpu.memory_space<vmem>>, %arg4: memref<128x128xf32, #tpu.memory_space<vmem>>, %arg5: memref<1x128xf32, #tpu.memory_space<vmem>>, %arg6: memref<128x128xf32, #tpu.memory_space<vmem>>, %arg7: memref<1x128xf32, #tpu.memory_space<vmem>>, %arg8: memref<128x128xf32, #tpu.memory_space<vmem>>, %arg9: memref<1x128xf32, #tpu.memory_space<vmem>>, %arg10: memref<256x128xf32, #tpu.memory_space<vmem>>, %arg11: memref<256x128xf32, #tpu.memory_space<vmem>>) attributes {dimension_semantics = [#tpu.dimension_semantics<parallel>], iteration_bounds = array<i64: 2>, scalar_prefetch = 0 : i64, scratch_operands = 0 : i64, tpu.core_type = #tpu.core_type<tc>, window_params = [{transform_indices = @transform_0, window_bounds = array<i64: 256, 32>}, {pipeline_mode = #tpu.pipeline_mode<synchronous>, transform_indices = @transform_1, window_bounds = array<i64: 32, 128>}, {pipeline_mode = #tpu.pipeline_mode<synchronous>, transform_indices = @transform_2, window_bounds = array<i64: 1, 128>}, {pipeline_mode = #tpu.pipeline_mode<synchronous>, transform_indices = @transform_3, window_bounds = array<i64: 128, 128>}, {pipeline_mode = #tpu.pipeline_mode<synchronous>, transform_indices = @transform_4, window_bounds = array<i64: 1, 128>}, {pipeline_mode = #tpu.pipeline_mode<synchronous>, transform_indices = @transform_5, window_bounds = array<i64: 128, 128>}, {pipeline_mode = #tpu.pipeline_mode<synchronous>, transform_indices = @transform_6, window_bounds = array<i64: 1, 128>}, {pipeline_mode = #tpu.pipeline_mode<synchronous>, transform_indices = @transform_7, window_bounds = array<i64: 128, 128>}, {pipeline_mode = #tpu.pipeline_mode<synchronous>, transform_indices = @transform_8, window_bounds = array<i64: 1, 128>}, {transform_indices = @transform_9, window_bounds = array<i64: 256, 128>}, {transform_indices = @transform_10, window_bounds = array<i64: 256, 128>}]} {
    %c0 = arith.constant 0 : index
    %c0_0 = arith.constant 0 : index
    %0 = vector.load %arg1[%c0, %c0_0] : memref<256x32xf32, #tpu.memory_space<vmem>>, vector<256x32xf32>
    %c0_1 = arith.constant 0 : index
    %c0_2 = arith.constant 0 : index
    %1 = vector.load %arg2[%c0_1, %c0_2] : memref<32x128xf32, #tpu.memory_space<vmem>>, vector<32x128xf32>
    %cst = arith.constant dense<0.000000e+00> : vector<256x128xf32>
    %2 = tpu.matmul %0, %1, %cst {dimension_numbers = #tpu.dot_dimension_numbers<[1], [0], [0], [1], [0, 0, 1, 1], [], []>} : vector<256x32xf32>, vector<32x128xf32>, vector<256x128xf32> -> vector<256x128xf32>
    %c0_3 = arith.constant 0 : index
    %c0_4 = arith.constant 0 : index
    %3 = vector.load %arg3[%c0_3, %c0_4] : memref<1x128xf32, #tpu.memory_space<vmem>>, vector<1x128xf32>
    %4 = vector.broadcast %3 : vector<1x128xf32> to vector<256x128xf32>
    %5 = arith.addf %2, %4 : vector<256x128xf32>
    %cst_5 = arith.constant 0.000000e+00 : f32
    %6 = vector.broadcast %cst_5 : f32 to vector<256x128xf32>
    %7 = arith.maximumf %5, %6 : vector<256x128xf32>
    %c0_6 = arith.constant 0 : index
    %c0_7 = arith.constant 0 : index
    %8 = vector.load %arg4[%c0_6, %c0_7] : memref<128x128xf32, #tpu.memory_space<vmem>>, vector<128x128xf32>
    %cst_8 = arith.constant dense<0.000000e+00> : vector<256x128xf32>
    %9 = tpu.matmul %7, %8, %cst_8 {dimension_numbers = #tpu.dot_dimension_numbers<[1], [0], [0], [1], [0, 0, 1, 1], [], []>} : vector<256x128xf32>, vector<128x128xf32>, vector<256x128xf32> -> vector<256x128xf32>
    %c0_9 = arith.constant 0 : index
    %c0_10 = arith.constant 0 : index
    %10 = vector.load %arg5[%c0_9, %c0_10] : memref<1x128xf32, #tpu.memory_space<vmem>>, vector<1x128xf32>
    %11 = vector.broadcast %10 : vector<1x128xf32> to vector<256x128xf32>
    %12 = arith.addf %9, %11 : vector<256x128xf32>
    %cst_11 = arith.constant 0.000000e+00 : f32
    %13 = vector.broadcast %cst_11 : f32 to vector<256x128xf32>
    %14 = arith.maximumf %12, %13 : vector<256x128xf32>
    %c0_12 = arith.constant 0 : index
    %c0_13 = arith.constant 0 : index
    %15 = vector.load %arg10[%c0_12, %c0_13] : memref<256x128xf32, #tpu.memory_space<vmem>>, vector<256x128xf32>
    tpu.vector_store %arg10[%c0_12, %c0_13], %14 {strides = array<i32>} : memref<256x128xf32, #tpu.memory_space<vmem>>, vector<256x128xf32>,
    %c0_14 = arith.constant 0 : index
    %c0_15 = arith.constant 0 : index
    %16 = vector.load %arg6[%c0_14, %c0_15] : memref<128x128xf32, #tpu.memory_space<vmem>>, vector<128x128xf32>
    %cst_16 = arith.constant dense<0.000000e+00> : vector<256x128xf32>
    %17 = tpu.matmul %14, %16, %cst_16 {dimension_numbers = #tpu.dot_dimension_numbers<[1], [0], [0], [1], [0, 0, 1, 1], [], []>} : vector<256x128xf32>, vector<128x128xf32>, vector<256x128xf32> -> vector<256x128xf32>
    %c0_17 = arith.constant 0 : index
    %c0_18 = arith.constant 0 : index
    %18 = vector.load %arg7[%c0_17, %c0_18] : memref<1x128xf32, #tpu.memory_space<vmem>>, vector<1x128xf32>
    %19 = vector.broadcast %18 : vector<1x128xf32> to vector<256x128xf32>
    %20 = arith.addf %17, %19 : vector<256x128xf32>
    %cst_19 = arith.constant 0.000000e+00 : f32
    %21 = vector.broadcast %cst_19 : f32 to vector<256x128xf32>
    %22 = arith.maximumf %20, %21 : vector<256x128xf32>
    %c0_20 = arith.constant 0 : index
    %c0_21 = arith.constant 0 : index
    %23 = vector.load %arg8[%c0_20, %c0_21] : memref<128x128xf32, #tpu.memory_space<vmem>>, vector<128x128xf32>
    %cst_22 = arith.constant dense<0.000000e+00> : vector<256x128xf32>
    %24 = tpu.matmul %22, %23, %cst_22 {dimension_numbers = #tpu.dot_dimension_numbers<[1], [0], [0], [1], [0, 0, 1, 1], [], []>} : vector<256x128xf32>, vector<128x128xf32>, vector<256x128xf32> -> vector<256x128xf32>
    %c0_23 = arith.constant 0 : index
    %c0_24 = arith.constant 0 : index
    %25 = vector.load %arg9[%c0_23, %c0_24] : memref<1x128xf32, #tpu.memory_space<vmem>>, vector<1x128xf32>
    %26 = vector.broadcast %25 : vector<1x128xf32> to vector<256x128xf32>
    %27 = arith.addf %24, %26 : vector<256x128xf32>
    %cst_25 = arith.constant 0.000000e+00 : f32
    %28 = vector.broadcast %cst_25 : f32 to vector<256x128xf32>
    %29 = arith.maximumf %27, %28 : vector<256x128xf32>
    %c0_26 = arith.constant 0 : index
    %c0_27 = arith.constant 0 : index
    %30 = vector.load %arg11[%c0_26, %c0_27] : memref<256x128xf32, #tpu.memory_space<vmem>>, vector<256x128xf32>
    tpu.vector_store %arg11[%c0_26, %c0_27], %29 {strides = array<i32>} : memref<256x128xf32, #tpu.memory_space<vmem>>, vector<256x128xf32>,
    return
  }
  func.func @transform_0(%arg0: i32) -> (i32, i32) {
    %c0_i32 = arith.constant 0 : i32
    %c0_i32_0 = arith.constant 0 : i32
    return %arg0, %c0_i32 : i32, i32
  }
  func.func @transform_1(%arg0: i32) -> (i32, i32) {
    %c0_i32 = arith.constant 0 : i32
    %c0_i32_0 = arith.constant 0 : i32
    %c0_i32_1 = arith.constant 0 : i32
    return %c0_i32, %c0_i32_0 : i32, i32
  }
  func.func @transform_2(%arg0: i32) -> (i32, i32) {
    %c0_i32 = arith.constant 0 : i32
    %c0_i32_0 = arith.constant 0 : i32
    %c0_i32_1 = arith.constant 0 : i32
    return %c0_i32, %c0_i32_0 : i32, i32
  }
  func.func @transform_3(%arg0: i32) -> (i32, i32) {
    %c0_i32 = arith.constant 0 : i32
    %c0_i32_0 = arith.constant 0 : i32
    %c0_i32_1 = arith.constant 0 : i32
    return %c0_i32, %c0_i32_0 : i32, i32
  }
  func.func @transform_4(%arg0: i32) -> (i32, i32) {
    %c0_i32 = arith.constant 0 : i32
    %c0_i32_0 = arith.constant 0 : i32
    %c0_i32_1 = arith.constant 0 : i32
    return %c0_i32, %c0_i32_0 : i32, i32
  }
  func.func @transform_5(%arg0: i32) -> (i32, i32) {
    %c0_i32 = arith.constant 0 : i32
    %c0_i32_0 = arith.constant 0 : i32
    %c0_i32_1 = arith.constant 0 : i32
    return %c0_i32, %c0_i32_0 : i32, i32
  }
  func.func @transform_6(%arg0: i32) -> (i32, i32) {
    %c0_i32 = arith.constant 0 : i32
    %c0_i32_0 = arith.constant 0 : i32
    %c0_i32_1 = arith.constant 0 : i32
    return %c0_i32, %c0_i32_0 : i32, i32
  }
  func.func @transform_7(%arg0: i32) -> (i32, i32) {
    %c0_i32 = arith.constant 0 : i32
    %c0_i32_0 = arith.constant 0 : i32
    %c0_i32_1 = arith.constant 0 : i32
    return %c0_i32, %c0_i32_0 : i32, i32
  }
  func.func @transform_8(%arg0: i32) -> (i32, i32) {
    %c0_i32 = arith.constant 0 : i32
    %c0_i32_0 = arith.constant 0 : i32
    %c0_i32_1 = arith.constant 0 : i32
    return %c0_i32, %c0_i32_0 : i32, i32
  }
  func.func @transform_9(%arg0: i32) -> (i32, i32) {
    %c0_i32 = arith.constant 0 : i32
    %c0_i32_0 = arith.constant 0 : i32
    return %arg0, %c0_i32 : i32, i32
  }
  func.func @transform_10(%arg0: i32) -> (i32, i32) {
    %c0_i32 = arith.constant 0 : i32
    %c0_i32_0 = arith.constant 0 : i32
    return %arg0, %c0_i32 : i32, i32
  }
}

</mosaic_0001>

<bundles_post_ra>
// kernel: tpu_custom_call.1
= control target key start
LH: loop header
LB: loop body
LE: loop exit
PB: predicated region body
PF: predicated region fallthrough
CT: control target
= control target key end

     0   :  { %16 = vsyncpa [#allocation3], 0  ;;  %s3274_s0 = inlined_call_operand.vmem [shape: f32[512,32], index: 0, kind: input, shape index: {}]   ;;  %s3275_s1 = inlined_call_operand.vmem [shape: f32[32,128], index: 1, kind: input, shape index: {}]   ;;  %s3276_s2 = inlined_call_operand.vmem [shape: f32[1,128], index: 2, kind: input, shape index: {}]   ;;  %s3277_s3 = inlined_call_operand.vmem [shape: f32[128,128], index: 3, kind: input, shape index: {}]   ;;  %s3278_s4 = inlined_call_operand.vmem [shape: f32[1,128], index: 4, kind: input, shape index: {}]   ;;  %s3279_s5 = inlined_call_operand.vmem [shape: f32[128,128], index: 5, kind: input, shape index: {}]   ;;  %s3280_s6 = inlined_call_operand.vmem [shape: f32[1,128], index: 6, kind: input, shape index: {}]   ;;  %s3281_s7 = inlined_call_operand.vmem [shape: f32[128,128], index: 7, kind: input, shape index: {}]   ;;  %s3282_s8 = inlined_call_operand.vmem [shape: f32[1,128], index: 8, kind: input, shape index: {}]   ;;  %s3283_s9 = inlined_call_operand.hbm [shape: f32[512,128], index: 9, kind: output, shape index: {0}]   ;;  %s3284_s10 = inlined_call_operand.hbm [shape: f32[512,128], index: 10, kind: output, shape index: {1}]  }
   0x1   :  { %18 = vsyncpa [#allocation3 + $0x1], 0 }
   0x2   :  { %19 = vsyncpa [#allocation5], 0 }
   0x3   :  { %21 = vsyncpa [#allocation5 + $0x1], 0  ;;  %s2654_s13 = smov 0   ;;  %s2656_s14 = smov 0  }
   0x4   :  { %s2658_s15 = smov 0   ;;  %s2660_s16 = smov 0  }
   0x5 LB: > { %s2675_s17 = sadd.s32 4294967295, %s2593_s16   ;;  %s1803_s18 = sadd.s32 4294967294, %s2593_s16   ;;  %s2593_s16 = sphi %s2660_s16, %s3299_s16   ;;  %s2589_s15 = sphi %s2658_s15, %s3298_s15   ;;  %s2585_s14 = sphi %s2656_s14, %s3297_s14   ;;  %s2581_s13 = sphi %s2654_s13, %s3296_s13  }
   0x6   : > { %s2679_s19 = sadd.s32 1, %s2593_s16   ;;  %s228_s20 = sadd.s32 1, %s2589_s15 }
   0x7   : > { %s225_s21 = ssub.s32 %s2593_s16, %s2679_s19  ;;  %p238_p0 = scmp.ne.s32.totalorder %s2589_s15, %s2585_s14 }
   0x8   : > { %p226_p1 = scmp.eq.s32.totalorder %s225_s21, 0  ;;  %p239_p2 = scmp.eq.s32.totalorder %s2675_s17, 1 }
   0x9   : > { %p244_p3 = scmp.ne.s32.totalorder %s2585_s14, %s2581_s13  ;;  %p245_p4 = scmp.eq.s32.totalorder %s1803_s18, 1 }
   0xa   : > { %s2690_s22 = scalar_select %p226_p1, %s2589_s15, %s228_s20  }
   0xb   : > { %p2692_p5 = por %p239_p2, %p238_p0  ;;  %p2696_p6 = por %p245_p4, %p244_p3 }
   0xc   : > { %p1806_p7 = scmp.ge.s32.totalorder %s2593_s16, 1  ;;  %p322_p8 = scmp.lt.s32.totalorder %s2593_s16, 3 }
   0xe   : > { %p323_p9 = pnand %p1806_p7, %p322_p8 }
   0xf   : > { %v405_v0 = vld [vmem:[%s3275_s1] sm:$0xff] (!%p323_p9)  ;;  %v406_v1 = vld [vmem:[%s3275_s1 + $0x8] sm:$0xff] (!%p323_p9)  ;;  %v407_v2 = vld [vmem:[%s3275_s1 + $0x10] sm:$0xff] (!%p323_p9)  ;;  %s1809_s11 = sshll.u32 (!%p323_p9), %s2675_s17, 5  ;;  %vm416_vm0 = vcmask (!%p323_p9), 261120   ;;  %s2980_s21 = sand.u32 (!%p323_p9), 1, %s2585_s14  }
  0x10   : > { %326 = sbr.rel (%p323_p9) target bundleno = 974 (0x3ce), region = 56  ;;  %v2333_v3 = vpack.c.bf16 (!%p323_p9), %v406_v1, %v405_v0  ;;  %v408_v4 = vld [vmem:[%s3275_s1 + $0x18] sm:$0xff] (!%p323_p9)  ;;  %p366_p10 = scmp.lt.s32.totalorder (!%p323_p9), %s1809_s11, 63  ;;  %v770_v5 = vld [vmem:[%s3277_s3] sm:$0xff] (!%p323_p9)  ;;  %v771_v6 = vld [vmem:[%s3277_s3 + $0x8] sm:$0xff] (!%p323_p9) }
  0x11   : > { %v2337_v7 = vpack.c.bf16 (!%p323_p9), %v408_v4, %v407_v2  ;;  %v2341_v8 = vpack.c.bf16 (!%p323_p9), %v771_v6, %v770_v5  ;;  %v772_v9 = vld [vmem:[%s3277_s3 + $0x10] sm:$0xff] (!%p323_p9)  ;;  %v773_v10 = vld [vmem:[%s3277_s3 + $0x18] sm:$0xff] (!%p323_p9)  ;;  %v774_v12 = vld [vmem:[%s3277_s3 + $0x20] sm:$0xff] (!%p323_p9)  ;;  %s3285_s27 = sshll.u32 (!%p323_p9), %s2980_s21, 8  ;;  %s2595_s20 = smov (!%p323_p9), [#allocation2]  }
  0x12   : > { %2334 = vmatprep.subr.bf16.mxu0 (!%p323_p9), %v2333_v3  ;;  %v2345_v11 = vpack.c.bf16 (!%p323_p9), %v773_v10, %v772_v9  ;;  %v775_v13 = vld [vmem:[%s3277_s3 + $0x28] sm:$0xff] (!%p323_p9)  ;;  %v776_v16 = vld [vmem:[%s3277_s3 + $0x30] sm:$0xff] (!%p323_p9)  ;;  %v777_v17 = vld [vmem:[%s3277_s3 + $0x38] sm:$0xff] (!%p323_p9)  ;;  %s2992_s29 = scalar_lea.vmem (!%p323_p9), [#allocation2], %s3285_s27  ;;  %s2503_s27 = sshll.u32 (!%p323_p9), %s2595_s20, 4  ;;  %s2504_s27 = int_to_ptr.vmem [resolvable:$false] %s2503_s27 }
  0x13   : > { %2336 = vmatpush3.bf16.msra.mxu0 (!%p323_p9), %v2333_v3  ;;  %2342 = vmatprep.subr.bf16.mxu1 (!%p323_p9), %v2341_v8  ;;  %v2349_v14 = vpack.c.bf16 (!%p323_p9), %v775_v13, %v774_v12  ;;  %v2353_v20 = vpack.c.bf16 (!%p323_p9), %v777_v17, %v776_v16  ;;  %v778_v21 = vld [vmem:[%s3277_s3 + $0x40] sm:$0xff] (!%p323_p9)  ;;  %v779_v22 = vld [vmem:[%s3277_s3 + $0x48] sm:$0xff] (!%p323_p9)  ;;  %v780_v26 = vld [vmem:[%s3277_s3 + $0x50] sm:$0xff] (!%p323_p9)  ;;  %s1693_s26 = sshll.u32 (!%p323_p9), %s2992_s29, 4  ;;  %s3118_s26 = int_to_ptr.vmem [resolvable:$true] %s1693_s26 }
  0x14   : > { %2338 = vmatprep.subr.bf16.mxu0 (!%p323_p9), %v2337_v7  ;;  %2344 = vmatpush3.bf16.msra.mxu1 (!%p323_p9), %v2341_v8  ;;  %v2357_v25 = vpack.c.bf16 (!%p323_p9), %v779_v22, %v778_v21  ;;  %v781_v27 = vld [vmem:[%s3277_s3 + $0x58] sm:$0xff] (!%p323_p9)  ;;  %v782_v31 = vld [vmem:[%s3277_s3 + $0x60] sm:$0xff] (!%p323_p9)  ;;  %v783_v32 = vld [vmem:[%s3277_s3 + $0x68] sm:$0xff] (!%p323_p9)  ;;  %s2499_s18 = scalar_lea.vmem (!%p323_p9), %s3118_s26, 4096  ;;  %p2506_p0 = scmp.lt.s32.totalorder (!%p323_p9), %s3118_s26, %s2504_s27 }
  0x15   : > { %2346 = vmatprep.subr.bf16.mxu1 (!%p323_p9), %v2345_v11  ;;  %v2361_v30 = vpack.c.bf16 (!%p323_p9), %v781_v27, %v780_v26  ;;  %v2365_v35 = vpack.c.bf16 (!%p323_p9), %v783_v32, %v782_v31  ;;  %v784_v59 = vld [vmem:[%s3277_s3 + $0x70] sm:$0xff] (!%p323_p9)  ;;  %v785_v60 = vld [vmem:[%s3277_s3 + $0x78] sm:$0xff] (!%p323_p9)  ;;  %v1082_v62 = vld [vmem:[%s3279_s5] sm:$0xff] (!%p323_p9)  ;;  %p2500_p11 = scmp.ne.s32.totalorder (!%p323_p9), %s3118_s26, %s2499_s18 }
  0x16   : > { %v2369_v61 = vpack.c.bf16 (!%p323_p9), %v785_v60, %v784_v59  ;;  %v1083_v63 = vld [vmem:[%s3279_s5 + $0x8] sm:$0xff] (!%p323_p9)  ;;  %v1084_v0 = vld [vmem:[%s3279_s5 + $0x10] sm:$0xff] (!%p323_p9)  ;;  %v1085_v2 = vld [vmem:[%s3279_s5 + $0x18] sm:$0xff] (!%p323_p9) }
  0x17   : > { %s3301_s11 = smov (!%p366_p10, %s1809_s11), 63  ;;  %2340 = vmatpush3.bf16.msra.mxu0 %v2337_v7  ;;  %v2373_v1 = vpack.c.bf16 %v1083_v63, %v1082_v62  ;;  %v2377_v3 = vpack.c.bf16 %v1085_v2, %v1084_v0  ;;  %v1086_v4 = vld [vmem:[%s3279_s5 + $0x20] sm:$0xff]  ;;  %v1087_v5 = vld [vmem:[%s3279_s5 + $0x28] sm:$0xff]  ;;  %v1088_v7 = vld [vmem:[%s3279_s5 + $0x30] sm:$0xff]  ;;  %p2501_p12 = pnand %p2500_p11, %p2692_p5 }
  0x18   : > { %s1810_s25 = sshll.u32 %s3301_s11, 3  ;;  %2348 = vmatpush3.bf16.msra.mxu1 %v2345_v11  ;;  %v2381_v6 = vpack.c.bf16 %v1087_v5, %v1086_v4  ;;  %v1089_v8 = vld [vmem:[%s3279_s5 + $0x38] sm:$0xff]  ;;  %v1090_v10 = vld [vmem:[%s3279_s5 + $0x40] sm:$0xff]  ;;  %v1091_v11 = vld [vmem:[%s3279_s5 + $0x48] sm:$0xff] }
  0x19   : > { %s2736_s28 = scalar_lea.vmem %s3274_s0, %s1810_s25  ;;  %2350 = vmatprep.subr.bf16.mxu1 %v2349_v14  ;;  %2374 = vmatprep.subr.bf16.mxu0 %v2373_v1  ;;  %v2385_v9 = vpack.c.bf16 %v1089_v8, %v1088_v7  ;;  %v2389_v12 = vpack.c.bf16 %v1091_v11, %v1090_v10  ;;  %v1092_v13 = vld [vmem:[%s3279_s5 + $0x50] sm:$0xff]  ;;  %v1094_v16 = vld [vmem:[%s3279_s5 + $0x60] sm:$0xff]  ;;  %v1095_v17 = vld [vmem:[%s3279_s5 + $0x68] sm:$0xff]  ;;  %s3286_s25 = sshll.u32 %s2675_s17, 12 }
  0x1a   : > { %v373_v15 = vld [vmem:[%s2736_s28] sm:$0xff]  ;;  %v374_v18 = vld [vmem:[%s2736_s28 + $0x8] sm:$0xff]  ;;  %v375_v19 = vld [vmem:[%s2736_s28 + $0x10] sm:$0xff]  ;;  %s3116_s12 = scalar_lea.hbm %s3283_s9, %s3286_s25  ;;  %p2502_p13 = pneg %p2501_p12 }
  0x1b   : > { %2045 = vmatprep.mubr.msk.f32.mxu0 %vm416_vm0, %v373_v15  ;;  %v376_v23 = vld [vmem:[%s2736_s28 + $0x18] sm:$0xff]  ;;  %v377_v24 = vld [vmem:[%s2736_s28 + $0x20] sm:$0xff]  ;;  %v378_v28 = vld [vmem:[%s2736_s28 + $0x28] sm:$0xff] }
  0x1c   : > { %2046 = vmatmul.mubr.msk.f32.vlgmr.msra.gmra.mrb[0].mxu0 %vm416_vm0, %v374_v18  ;;  %2352 = vmatpush3.bf16.msra.mxu1 %v2349_v14  ;;  %v379_v29 = vld [vmem:[%s2736_s28 + $0x30] sm:$0xff]  ;;  %v380_v33 = vld [vmem:[%s2736_s28 + $0x38] sm:$0xff]  ;;  %v381_v34 = vld [vmem:[%s2736_s28 + $0x40] sm:$0xff]  ;;  %v2397_v18 = vpack.c.bf16 %v1095_v17, %v1094_v16 }
  0x1d   : > { %2048 = vmatprep.mubr.msk.f32.mxu0 %vm416_vm0, %v375_v19  ;;  %2354 = vmatprep.subr.bf16.mxu1 %v2353_v20  ;;  %v382_v36 = vld [vmem:[%s2736_s28 + $0x48] sm:$0xff]  ;;  %v383_v37 = vld [vmem:[%s2736_s28 + $0x50] sm:$0xff]  ;;  %v384_v38 = vld [vmem:[%s2736_s28 + $0x58] sm:$0xff] }
  0x1e   : > { %v385_v39 = vld [vmem:[%s2736_s28 + $0x60] sm:$0xff]  ;;  %v386_v40 = vld [vmem:[%s2736_s28 + $0x68] sm:$0xff]  ;;  %v387_v41 = vld [vmem:[%s2736_s28 + $0x70] sm:$0xff]  ;;  %2376 = vmatpush3.bf16.msra.mxu0 %v2373_v1 }
  0x1f   : > { %v388_v42 = vld [vmem:[%s2736_s28 + $0x78] sm:$0xff]  ;;  %v389_v43 = vld [vmem:[%s2736_s28 + $0x80] sm:$0xff]  ;;  %v390_v44 = vld [vmem:[%s2736_s28 + $0x88] sm:$0xff]  ;;  %2378 = vmatprep.subr.bf16.mxu0 %v2377_v3 }
  0x20   : > { %2049 = vmatmul.mubr.msk.f32.gmra.mrb[2].mxu0 %vm416_vm0, %v376_v23  ;;  %2356 = vmatpush3.bf16.msra.mxu1 %v2353_v20  ;;  %v391_v45 = vld [vmem:[%s2736_s28 + $0x90] sm:$0xff]  ;;  %v392_v46 = vld [vmem:[%s2736_s28 + $0x98] sm:$0xff]  ;;  %v393_v47 = vld [vmem:[%s2736_s28 + $0xa0] sm:$0xff] }
  0x21   : > { %2051 = vmatprep.mubr.msk.f32.mxu0 %vm416_vm0, %v377_v24  ;;  %2358 = vmatprep.subr.bf16.mxu1 %v2357_v25  ;;  %v394_v48 = vld [vmem:[%s2736_s28 + $0xa8] sm:$0xff]  ;;  %v395_v49 = vld [vmem:[%s2736_s28 + $0xb0] sm:$0xff]  ;;  %v396_v50 = vld [vmem:[%s2736_s28 + $0xb8] sm:$0xff] }
  0x22   : > { %v397_v51 = vld [vmem:[%s2736_s28 + $0xc0] sm:$0xff]  ;;  %v398_v52 = vld [vmem:[%s2736_s28 + $0xc8] sm:$0xff]  ;;  %v399_v53 = vld [vmem:[%s2736_s28 + $0xd0] sm:$0xff]  ;;  %2380 = vmatpush3.bf16.msra.mxu0 %v2377_v3 }
  0x23   : > { %v400_v54 = vld [vmem:[%s2736_s28 + $0xd8] sm:$0xff]  ;;  %v401_v55 = vld [vmem:[%s2736_s28 + $0xe0] sm:$0xff]  ;;  %v402_v56 = vld [vmem:[%s2736_s28 + $0xe8] sm:$0xff]  ;;  %2382 = vmatprep.subr.bf16.mxu0 %v2381_v6 }
  0x24   : > { %2052 = vmatmul.mubr.msk.f32.gmra.mrb[4].mxu0 %vm416_vm0, %v378_v28  ;;  %2360 = vmatpush3.bf16.msra.mxu1 %v2357_v25  ;;  %v403_v57 = vld [vmem:[%s2736_s28 + $0xf0] sm:$0xff]  ;;  %v404_v58 = vld [vmem:[%s2736_s28 + $0xf8] sm:$0xff]  ;;  %v2883_v22 = vld [vmem:[%s3276_s2] ss:$0 sm:$0xff] }
  0x25   : > { %2054 = vmatprep.mubr.msk.f32.mxu0 %vm416_vm0, %v379_v29  ;;  %2362 = vmatprep.subr.bf16.mxu1 %v2361_v30  ;;  %v1093_v14 = vld [vmem:[%s3279_s5 + $0x58] sm:$0xff]  ;;  %v1096_v19 = vld [vmem:[%s3279_s5 + $0x70] sm:$0xff] }
  0x26   : > { %2384 = vmatpush3.bf16.msra.mxu0 %v2381_v6  ;;  %v2393_v15 = vpack.c.bf16 %v1093_v14, %v1092_v13  ;;  %v1097_v20 = vld [vmem:[%s3279_s5 + $0x78] sm:$0xff] }
  0x27   : > { %2386 = vmatprep.subr.bf16.mxu0 %v2385_v9  ;;  %v2401_v21 = vpack.c.bf16 %v1097_v20, %v1096_v19 }
  0x28   : > { %2055 = vmatmul.mubr.msk.f32.gmra.mrb[6].mxu0 %vm416_vm0, %v380_v33  ;;  %2364 = vmatpush3.bf16.msra.mxu1 %v2361_v30 }
  0x29   : > { %2057 = vmatprep.mubr.msk.f32.mxu0 %vm416_vm0, %v381_v34  ;;  %2366 = vmatprep.subr.bf16.mxu1 %v2365_v35 }
  0x2a   : > { %2388 = vmatpush3.bf16.msra.mxu0 %v2385_v9 }
  0x2b   : > { %2390 = vmatprep.subr.bf16.mxu0 %v2389_v12 }
  0x2c   : > { %2058 = vmatmul.mubr.msk.f32.gmra.mrb[8].mxu0 %vm416_vm0, %v382_v36  ;;  %2368 = vmatpush3.bf16.msra.mxu1 %v2365_v35 }
  0x2d   : > { %2060 = vmatprep.mubr.msk.f32.mxu0 %vm416_vm0, %v383_v37  ;;  %2370 = vmatprep.subr.bf16.mxu1 %v2369_v61 }
  0x2e   : > { %2392 = vmatpush3.bf16.msra.mxu0 %v2389_v12 }
  0x2f   : > { %2394 = vmatprep.subr.bf16.mxu0 %v2393_v15 }
  0x30   : > { %2061 = vmatmul.mubr.msk.f32.gmra.mrb[10].mxu0 %vm416_vm0, %v384_v38  ;;  %2372 = vmatpush3.bf16.msra.mxu1 %v2369_v61 }
  0x31   : > { %2063 = vmatprep.mubr.msk.f32.mxu0 %vm416_vm0, %v385_v39 }
  0x32   : > { %2396 = vmatpush3.bf16.msra.mxu0 %v2393_v15 }
  0x33   : > { %2398 = vmatprep.subr.bf16.mxu0 %v2397_v18 }
  0x34   : > { %2064 = vmatmul.mubr.msk.f32.gmra.mrb[12].mxu0 %vm416_vm0, %v386_v40 }
  0x35   : > { %2066 = vmatprep.mubr.msk.f32.mxu0 %vm416_vm0, %v387_v41 }
  0x36   : > { %2400 = vmatpush3.bf16.msra.mxu0 %v2397_v18 }
  0x37   : > { %2402 = vmatprep.subr.bf16.mxu0 %v2401_v21 }
  0x38   : > { %2067 = vmatmul.mubr.msk.f32.gmra.mrb[14].mxu0 %vm416_vm0, %v388_v42 }
  0x39   : > { %2069 = vmatprep.mubr.msk.f32.mxu0 %vm416_vm0, %v389_v43 }
  0x3a   : > { %2404 = vmatpush3.bf16.msra.mxu0 %v2401_v21 }
  0x3c   : > { %2070 = vmatmul.mubr.msk.f32.gmra.mrb[16].mxu0 %vm416_vm0, %v390_v44 }
  0x3d   : > { %2072 = vmatprep.mubr.msk.f32.mxu0 %vm416_vm0, %v391_v45 }
  0x40   : > { %2073 = vmatmul.mubr.msk.f32.gmra.mrb[18].mxu0 %vm416_vm0, %v392_v46 }
  0x41   : > { %2075 = vmatprep.mubr.msk.f32.mxu0 %vm416_vm0, %v393_v47 }
  0x44   : > { %2076 = vmatmul.mubr.msk.f32.gmra.mrb[20].mxu0 %vm416_vm0, %v394_v48 }
  0x45   : > { %2078 = vmatprep.mubr.msk.f32.mxu0 %vm416_vm0, %v395_v49 }
  0x48   : > { %2079 = vmatmul.mubr.msk.f32.gmra.mrb[22].mxu0 %vm416_vm0, %v396_v50 }
  0x49   : > { %2081 = vmatprep.mubr.msk.f32.mxu0 %vm416_vm0, %v397_v51 }
  0x4c   : > { %2082 = vmatmul.mubr.msk.f32.gmra.mrb[24].mxu0 %vm416_vm0, %v398_v52 }
  0x4d   : > { %2084 = vmatprep.mubr.msk.f32.mxu0 %vm416_vm0, %v399_v53 }
  0x50   : > { %2085 = vmatmul.mubr.msk.f32.gmra.mrb[26].mxu0 %vm416_vm0, %v400_v54 }
  0x51   : > { %2087 = vmatprep.mubr.msk.f32.mxu0 %vm416_vm0, %v401_v55 }
  0x54   : > { %2088 = vmatmul.mubr.msk.f32.gmra.mrb[28].mxu0 %vm416_vm0, %v402_v56 }
  0x55   : > { %2090 = vmatprep.mubr.msk.f32.mxu0 %vm416_vm0, %v403_v57 }
  0x58   : > { %2091 = vmatmul.mubr.msk.f32.gmra.mrb[30].mxu0 %vm416_vm0, %v404_v58 }
  0xef   : > { %v2047_v23 = vpop.f32.mrb[0].mxu0 }
  0xf0   : > { %v585_v24 = vadd.f32 %v2047_v23, %v2883_v22  ;;  %v579_v25 = vpop.f32.mrb[1].mxu0 }
  0xf1   : > { %v580_v26 = vadd.f32 %v2883_v22, %v579_v25 }
  0xf2   : > { %v739_v29 = vmax.f32 %v585_v24, 0.0 }
  0xf3   : > { %v2050_v27 = vpop.f32.mrb[2].mxu0  ;;  %v738_v28 = vmax.f32 %v580_v26, 0.0 }
  0xf4   : > { %v595_v30 = vadd.f32 %v2050_v27, %v2883_v22  ;;  %v589_v31 = vpop.f32.mrb[3].mxu0 }
  0xf5   : > { %v590_v32 = vadd.f32 %v2883_v22, %v589_v31  ;;  %2125 = vmatprep.mubr.f32.mxu1 %v738_v28 }
  0xf6   : > { %2126 = vmatmul.mubr.f32.vlgmr.msra.gmra.mrb[0].mxu1 %v739_v29  ;;  %v741_v35 = vmax.f32 %v595_v30, 0.0 }
  0xf7   : > { %v740_v33 = vmax.f32 %v590_v32, 0.0  ;;  %v2053_v34 = vpop.f32.mrb[4].mxu0 }
  0xf8   : > { %v605_v36 = vadd.f32 %v2053_v34, %v2883_v22  ;;  %v599_v37 = vpop.f32.mrb[5].mxu0 }
  0xf9   : > { %v600_v38 = vadd.f32 %v2883_v22, %v599_v37  ;;  %2128 = vmatprep.mubr.f32.mxu1 %v740_v33 }
  0xfa   : > { %2129 = vmatmul.mubr.f32.gmra.mrb[2].mxu1 %v741_v35  ;;  %v743_v41 = vmax.f32 %v605_v36, 0.0 }
  0xfb   : > { %v742_v39 = vmax.f32 %v600_v38, 0.0  ;;  %v2056_v40 = vpop.f32.mrb[6].mxu0 }
  0xfc   : > { %v615_v42 = vadd.f32 %v2056_v40, %v2883_v22  ;;  %v609_v43 = vpop.f32.mrb[7].mxu0 }
  0xfd   : > { %v610_v44 = vadd.f32 %v2883_v22, %v609_v43  ;;  %2131 = vmatprep.mubr.f32.mxu1 %v742_v39 }
  0xfe   : > { %2132 = vmatmul.mubr.f32.gmra.mrb[4].mxu1 %v743_v41  ;;  %v745_v47 = vmax.f32 %v615_v42, 0.0 }
  0xff   : > { %v744_v45 = vmax.f32 %v610_v44, 0.0  ;;  %v2059_v46 = vpop.f32.mrb[8].mxu0 }
 0x100   : > { %v625_v48 = vadd.f32 %v2059_v46, %v2883_v22  ;;  %v619_v49 = vpop.f32.mrb[9].mxu0 }
 0x101   : > { %v620_v50 = vadd.f32 %v2883_v22, %v619_v49  ;;  %2134 = vmatprep.mubr.f32.mxu1 %v744_v45 }
 0x102   : > { %2135 = vmatmul.mubr.f32.gmra.mrb[6].mxu1 %v745_v47  ;;  %v747_v53 = vmax.f32 %v625_v48, 0.0 }
 0x103   : > { %v746_v51 = vmax.f32 %v620_v50, 0.0  ;;  %v2062_v52 = vpop.f32.mrb[10].mxu0 }
 0x104   : > { %v635_v54 = vadd.f32 %v2062_v52, %v2883_v22  ;;  %v629_v55 = vpop.f32.mrb[11].mxu0 }
 0x105   : > { %v630_v56 = vadd.f32 %v2883_v22, %v629_v55  ;;  %2137 = vmatprep.mubr.f32.mxu1 %v746_v51 }
 0x106   : > { %2138 = vmatmul.mubr.f32.gmra.mrb[8].mxu1 %v747_v53  ;;  %v749_v59 = vmax.f32 %v635_v54, 0.0 }
 0x107   : > { %v748_v57 = vmax.f32 %v630_v56, 0.0  ;;  %v2065_v58 = vpop.f32.mrb[12].mxu0  ;;  %v1362_v56 = vld [vmem:[%s3281_s7] sm:$0xff] }
 0x108   : > { %v645_v60 = vadd.f32 %v2065_v58, %v2883_v22  ;;  %v639_v61 = vpop.f32.mrb[13].mxu0  ;;  %v1364_v58 = vld [vmem:[%s3281_s7 + $0x10] sm:$0xff] }
 0x109   : > { %v640_v62 = vadd.f32 %v2883_v22, %v639_v61  ;;  %2140 = vmatprep.mubr.f32.mxu1 %v748_v57  ;;  %v1363_v57 = vld [vmem:[%s3281_s7 + $0x8] sm:$0xff]  ;;  %v1366_v61 = vld [vmem:[%s3281_s7 + $0x20] sm:$0xff] }
 0x10a   : > { %2141 = vmatmul.mubr.f32.gmra.mrb[10].mxu1 %v749_v59  ;;  %v751_v1 = vmax.f32 %v645_v60, 0.0  ;;  %v2405_v59 = vpack.c.bf16 %v1363_v57, %v1362_v56 }
 0x10b   : > { %v750_v63 = vmax.f32 %v640_v62, 0.0  ;;  %v2068_v0 = vpop.f32.mrb[14].mxu0  ;;  %v1367_v62 = vld [vmem:[%s3281_s7 + $0x28] sm:$0xff] }
 0x10c   : > { %v655_v2 = vadd.f32 %v2068_v0, %v2883_v22  ;;  %v649_v3 = vpop.f32.mrb[15].mxu0  ;;  %2437 = vmatprep.subr.bf16.mxu1 %v2405_v59  ;;  %2406 = vmatprep.subr.bf16.mxu0 %v2405_v59  ;;  %v1368_v0 = vld [vmem:[%s3281_s7 + $0x30] sm:$0xff] }
 0x10d   : > { %v650_v4 = vadd.f32 %v2883_v22, %v649_v3  ;;  %2143 = vmatprep.mubr.f32.mxu1 %v750_v63  ;;  %2445 = vmatpush3.bf16.msra.mxu1 %v2405_v59  ;;  %v2935_v63 = vpack.c.bf16 %v1367_v62, %v1366_v61  ;;  %v1370_v3 = vld [vmem:[%s3281_s7 + $0x40] sm:$0xff] }
 0x10e   : > { %2144 = vmatmul.mubr.f32.gmra.mrb[12].mxu1 %v751_v1  ;;  %v753_v7 = vmax.f32 %v655_v2, 0.0  ;;  %v1369_v1 = vld [vmem:[%s3281_s7 + $0x38] sm:$0xff] }
 0x10f   : > { %v752_v5 = vmax.f32 %v650_v4, 0.0  ;;  %v2071_v6 = vpop.f32.mrb[16].mxu0  ;;  %v2944_v2 = vpack.c.bf16 %v1369_v1, %v1368_v0  ;;  %v1371_v4 = vld [vmem:[%s3281_s7 + $0x48] sm:$0xff] }
 0x110   : > { %v665_v8 = vadd.f32 %v2071_v6, %v2883_v22  ;;  %v659_v9 = vpop.f32.mrb[17].mxu0  ;;  %v1372_v6 = vld [vmem:[%s3281_s7 + $0x50] sm:$0xff] }
 0x111   : > { %v660_v10 = vadd.f32 %v2883_v22, %v659_v9  ;;  %2146 = vmatprep.mubr.f32.mxu1 %v752_v5  ;;  %v2954_v5 = vpack.c.bf16 %v1371_v4, %v1370_v3  ;;  %v1374_v9 = vld [vmem:[%s3281_s7 + $0x60] sm:$0xff] }
 0x112   : > { %2147 = vmatmul.mubr.f32.gmra.mrb[14].mxu1 %v753_v7  ;;  %v755_v13 = vmax.f32 %v665_v8, 0.0  ;;  %v1373_v7 = vld [vmem:[%s3281_s7 + $0x58] sm:$0xff] }
 0x113   : > { %v754_v11 = vmax.f32 %v660_v10, 0.0  ;;  %v2074_v12 = vpop.f32.mrb[18].mxu0  ;;  %v2964_v8 = vpack.c.bf16 %v1373_v7, %v1372_v6  ;;  %v1375_v10 = vld [vmem:[%s3281_s7 + $0x68] sm:$0xff] }
 0x114   : > { %v675_v14 = vadd.f32 %v2074_v12, %v2883_v22  ;;  %v669_v15 = vpop.f32.mrb[19].mxu0  ;;  %v2985_v12 = vld [vmem:[%s3278_s4] ss:$0 sm:$0xff] }
 0x115   : > { %v670_v16 = vadd.f32 %v2883_v22, %v669_v15  ;;  %2149 = vmatprep.mubr.f32.mxu1 %v754_v11  ;;  %v2974_v11 = vpack.c.bf16 %v1375_v10, %v1374_v9 }
 0x116   : > { %2150 = vmatmul.mubr.f32.gmra.mrb[16].mxu1 %v755_v13  ;;  %v757_v19 = vmax.f32 %v675_v14, 0.0 }
 0x117   : > { %v756_v17 = vmax.f32 %v670_v16, 0.0  ;;  %v2077_v18 = vpop.f32.mrb[20].mxu0 }
 0x118   : > { %v685_v20 = vadd.f32 %v2077_v18, %v2883_v22  ;;  %v679_v21 = vpop.f32.mrb[21].mxu0 }
 0x119   : > { %v680_v23 = vadd.f32 %v2883_v22, %v679_v21  ;;  %2152 = vmatprep.mubr.f32.mxu1 %v756_v17 }
 0x11a   : > { %2153 = vmatmul.mubr.f32.gmra.mrb[18].mxu1 %v757_v19  ;;  %v759_v26 = vmax.f32 %v685_v20, 0.0 }
 0x11b   : > { %v758_v24 = vmax.f32 %v680_v23, 0.0  ;;  %v2080_v25 = vpop.f32.mrb[22].mxu0 }
 0x11c   : > { %v695_v27 = vadd.f32 %v2080_v25, %v2883_v22  ;;  %v689_v28 = vpop.f32.mrb[23].mxu0 }
 0x11d   : > { %v690_v29 = vadd.f32 %v2883_v22, %v689_v28  ;;  %2155 = vmatprep.mubr.f32.mxu1 %v758_v24 }
 0x11e   : > { %2156 = vmatmul.mubr.f32.gmra.mrb[20].mxu1 %v759_v26  ;;  %v761_v32 = vmax.f32 %v695_v27, 0.0 }
 0x11f   : > { %v760_v30 = vmax.f32 %v690_v29, 0.0  ;;  %v2083_v31 = vpop.f32.mrb[24].mxu0 }
 0x120   : > { %v705_v33 = vadd.f32 %v2083_v31, %v2883_v22  ;;  %v699_v34 = vpop.f32.mrb[25].mxu0 }
 0x121   : > { %v700_v35 = vadd.f32 %v2883_v22, %v699_v34  ;;  %2158 = vmatprep.mubr.f32.mxu1 %v760_v30 }
 0x122   : > { %2159 = vmatmul.mubr.f32.gmra.mrb[22].mxu1 %v761_v32  ;;  %v763_v38 = vmax.f32 %v705_v33, 0.0 }
 0x123   : > { %v762_v36 = vmax.f32 %v700_v35, 0.0  ;;  %v2086_v37 = vpop.f32.mrb[26].mxu0 }
 0x124   : > { %v715_v39 = vadd.f32 %v2086_v37, %v2883_v22  ;;  %v709_v40 = vpop.f32.mrb[27].mxu0 }
 0x125   : > { %v710_v41 = vadd.f32 %v2883_v22, %v709_v40  ;;  %2161 = vmatprep.mubr.f32.mxu1 %v762_v36 }
 0x126   : > { %2162 = vmatmul.mubr.f32.gmra.mrb[24].mxu1 %v763_v38  ;;  %v765_v44 = vmax.f32 %v715_v39, 0.0 }
 0x127   : > { %v764_v42 = vmax.f32 %v710_v41, 0.0  ;;  %v2089_v43 = vpop.f32.mrb[28].mxu0 }
 0x128   : > { %v725_v45 = vadd.f32 %v2089_v43, %v2883_v22  ;;  %v719_v46 = vpop.f32.mrb[29].mxu0 }
 0x129   : > { %v720_v47 = vadd.f32 %v2883_v22, %v719_v46  ;;  %2164 = vmatprep.mubr.f32.mxu1 %v764_v42 }
 0x12a   : > { %2165 = vmatmul.mubr.f32.gmra.mrb[26].mxu1 %v765_v44  ;;  %v767_v50 = vmax.f32 %v725_v45, 0.0 }
 0x12b   : > { %v766_v48 = vmax.f32 %v720_v47, 0.0  ;;  %v2092_v49 = vpop.f32.mrb[30].mxu0 }
 0x12c   : > { %v735_v51 = vadd.f32 %v2092_v49, %v2883_v22  ;;  %v729_v52 = vpop.f32.mrb[31].mxu0 }
 0x12d   : > { %v730_v53 = vadd.f32 %v2883_v22, %v729_v52  ;;  %2167 = vmatprep.mubr.f32.mxu1 %v766_v48  ;;  %v1365_v22 = vld [vmem:[%s3281_s7 + $0x18] sm:$0xff] }
 0x12e   : > { %2168 = vmatmul.mubr.f32.gmra.mrb[28].mxu1 %v767_v50  ;;  %v769_v55 = vmax.f32 %v735_v51, 0.0  ;;  %v2409_v60 = vpack.c.bf16 %v1365_v22, %v1364_v58 }
 0x12f   : > { %v768_v54 = vmax.f32 %v730_v53, 0.0 }
 0x130   : > { %2438 = vmatprep.subr.bf16.mxu1 %v2409_v60 }
 0x131   : > { %2170 = vmatprep.mubr.f32.mxu1 %v768_v54  ;;  %2446 = vmatpush3.bf16.msra.mxu1 %v2409_v60 }
 0x132   : > { %2171 = vmatmul.mubr.f32.gmra.mrb[30].mxu1 %v769_v55  ;;  %2439 = vmatprep.subr.bf16.mxu1 %v2935_v63 }
 0x135   : > { %2447 = vmatpush3.bf16.msra.mxu1 %v2935_v63 }
 0x136   : > { %2440 = vmatprep.subr.bf16.mxu1 %v2944_v2 }
 0x139   : > { %2448 = vmatpush3.bf16.msra.mxu1 %v2944_v2 }
 0x13a   : > { %2441 = vmatprep.subr.bf16.mxu1 %v2954_v5 }
 0x13d   : > { %2449 = vmatpush3.bf16.msra.mxu1 %v2954_v5 }
 0x13e   : > { %2442 = vmatprep.subr.bf16.mxu1 %v2964_v8 }
 0x141   : > { %2450 = vmatpush3.bf16.msra.mxu1 %v2964_v8 }
 0x142   : > { %2443 = vmatprep.subr.bf16.mxu1 %v2974_v11 }
 0x145   : > { %2451 = vmatpush3.bf16.msra.mxu1 %v2974_v11 }
 0x1c9   : > { %v2127_v13 = vpop.f32.mrb[0].mxu1 }
 0x1ca   : > { %v865_v14 = vadd.f32 %v2127_v13, %v2985_v12  ;;  %v859_v15 = vpop.f32.mrb[1].mxu1 }
 0x1cb   : > { %v860_v16 = vadd.f32 %v2985_v12, %v859_v15 }
 0x1cc   : > { %v1019_v17 = vmax.f32 %v865_v14, 0.0 }
 0x1cd   : > { %v1018_v18 = vmax.f32 %v860_v16, 0.0  ;;  %v2130_v19 = vpop.f32.mrb[2].mxu1 }
 0x1ce   : > { %1051 = vst [vmem:[%s2992_s29 + $0x8] sm:$0xff] %v1019_v17  ;;  %v875_v20 = vadd.f32 %v2130_v19, %v2985_v12  ;;  %v869_v21 = vpop.f32.mrb[3].mxu1 }
 0x1cf   : > { %1050 = vst [vmem:[%s2992_s29] sm:$0xff] %v1018_v18  ;;  %v870_v23 = vadd.f32 %v2985_v12, %v869_v21  ;;  %2205 = vmatprep.mubr.f32.mxu0 %v1018_v18 }
 0x1d0   : > { %v1021_v24 = vmax.f32 %v875_v20, 0.0  ;;  %2206 = vmatmul.mubr.f32.vlgmr.msra.gmra.mrb[32].mxu0 %v1019_v17 }
 0x1d1   : > { %v1020_v25 = vmax.f32 %v870_v23, 0.0  ;;  %v2133_v26 = vpop.f32.mrb[4].mxu1  ;;  %2408 = vmatpush3.bf16.msra.mxu0 %v2405_v59 }
 0x1d2   : > { %1053 = vst [vmem:[%s2992_s29 + $0x18] sm:$0xff] %v1021_v24  ;;  %v885_v27 = vadd.f32 %v2133_v26, %v2985_v12  ;;  %v879_v28 = vpop.f32.mrb[5].mxu1  ;;  %2410 = vmatprep.subr.bf16.mxu0 %v2409_v60 }
 0x1d3   : > { %1052 = vst [vmem:[%s2992_s29 + $0x10] sm:$0xff] %v1020_v25  ;;  %v880_v29 = vadd.f32 %v2985_v12, %v879_v28  ;;  %2208 = vmatprep.mubr.f32.mxu0 %v1020_v25 }
 0x1d4   : > { %v1023_v30 = vmax.f32 %v885_v27, 0.0  ;;  %2209 = vmatmul.mubr.f32.gmra.mrb[34].mxu0 %v1021_v24 }
 0x1d5   : > { %v1022_v31 = vmax.f32 %v880_v29, 0.0  ;;  %v2136_v32 = vpop.f32.mrb[6].mxu1  ;;  %2412 = vmatpush3.bf16.msra.mxu0 %v2409_v60 }
 0x1d6   : > { %1055 = vst [vmem:[%s2992_s29 + $0x28] sm:$0xff] %v1023_v30  ;;  %v895_v33 = vadd.f32 %v2136_v32, %v2985_v12  ;;  %v889_v34 = vpop.f32.mrb[7].mxu1  ;;  %2414 = vmatprep.subr.bf16.mxu0 %v2935_v63 }
 0x1d7   : > { %1054 = vst [vmem:[%s2992_s29 + $0x20] sm:$0xff] %v1022_v31  ;;  %v890_v35 = vadd.f32 %v2985_v12, %v889_v34  ;;  %2211 = vmatprep.mubr.f32.mxu0 %v1022_v31 }
 0x1d8   : > { %v1025_v36 = vmax.f32 %v895_v33, 0.0  ;;  %2212 = vmatmul.mubr.f32.gmra.mrb[36].mxu0 %v1023_v30 }
 0x1d9   : > { %v1024_v37 = vmax.f32 %v890_v35, 0.0  ;;  %v2139_v38 = vpop.f32.mrb[8].mxu1  ;;  %2416 = vmatpush3.bf16.msra.mxu0 %v2935_v63 }
 0x1da   : > { %1057 = vst [vmem:[%s2992_s29 + $0x38] sm:$0xff] %v1025_v36  ;;  %v905_v39 = vadd.f32 %v2139_v38, %v2985_v12  ;;  %v899_v40 = vpop.f32.mrb[9].mxu1  ;;  %2418 = vmatprep.subr.bf16.mxu0 %v2944_v2 }
 0x1db   : > { %1056 = vst [vmem:[%s2992_s29 + $0x30] sm:$0xff] %v1024_v37  ;;  %v900_v41 = vadd.f32 %v2985_v12, %v899_v40  ;;  %2214 = vmatprep.mubr.f32.mxu0 %v1024_v37 }
 0x1dc   : > { %v1027_v42 = vmax.f32 %v905_v39, 0.0  ;;  %2215 = vmatmul.mubr.f32.gmra.mrb[38].mxu0 %v1025_v36 }
 0x1dd   : > { %v1026_v43 = vmax.f32 %v900_v41, 0.0  ;;  %v2142_v44 = vpop.f32.mrb[10].mxu1  ;;  %2420 = vmatpush3.bf16.msra.mxu0 %v2944_v2 }
 0x1de   : > { %1059 = vst [vmem:[%s2992_s29 + $0x48] sm:$0xff] %v1027_v42  ;;  %v915_v45 = vadd.f32 %v2142_v44, %v2985_v12  ;;  %v909_v46 = vpop.f32.mrb[11].mxu1  ;;  %2422 = vmatprep.subr.bf16.mxu0 %v2954_v5 }
 0x1df   : > { %1058 = vst [vmem:[%s2992_s29 + $0x40] sm:$0xff] %v1026_v43  ;;  %v910_v47 = vadd.f32 %v2985_v12, %v909_v46  ;;  %2217 = vmatprep.mubr.f32.mxu0 %v1026_v43 }
 0x1e0   : > { %v1029_v48 = vmax.f32 %v915_v45, 0.0  ;;  %2218 = vmatmul.mubr.f32.gmra.mrb[40].mxu0 %v1027_v42 }
 0x1e1   : > { %v1028_v49 = vmax.f32 %v910_v47, 0.0  ;;  %v2145_v50 = vpop.f32.mrb[12].mxu1  ;;  %2424 = vmatpush3.bf16.msra.mxu0 %v2954_v5  ;;  %v1376_v47 = vld [vmem:[%s3281_s7 + $0x70] sm:$0xff] }
 0x1e2   : > { %1061 = vst [vmem:[%s2992_s29 + $0x58] sm:$0xff] %v1029_v48  ;;  %v925_v51 = vadd.f32 %v2145_v50, %v2985_v12  ;;  %v919_v52 = vpop.f32.mrb[13].mxu1  ;;  %2426 = vmatprep.subr.bf16.mxu0 %v2964_v8 }
 0x1e3   : > { %1060 = vst [vmem:[%s2992_s29 + $0x50] sm:$0xff] %v1028_v49  ;;  %v920_v53 = vadd.f32 %v2985_v12, %v919_v52  ;;  %2220 = vmatprep.mubr.f32.mxu0 %v1028_v49 }
 0x1e4   : > { %v1031_v54 = vmax.f32 %v925_v51, 0.0  ;;  %2221 = vmatmul.mubr.f32.gmra.mrb[42].mxu0 %v1029_v48  ;;  %v1377_v48 = vld [vmem:[%s3281_s7 + $0x78] sm:$0xff] }
 0x1e5   : > { %v1030_v55 = vmax.f32 %v920_v53, 0.0  ;;  %v2148_v56 = vpop.f32.mrb[14].mxu1  ;;  %2428 = vmatpush3.bf16.msra.mxu0 %v2964_v8  ;;  %v2433_v49 = vpack.c.bf16 %v1377_v48, %v1376_v47 }
 0x1e6   : > { %1063 = vst [vmem:[%s2992_s29 + $0x68] sm:$0xff] %v1031_v54  ;;  %v935_v57 = vadd.f32 %v2148_v56, %v2985_v12  ;;  %v929_v58 = vpop.f32.mrb[15].mxu1  ;;  %2430 = vmatprep.subr.bf16.mxu0 %v2974_v11 }
 0x1e7   : > { %1062 = vst [vmem:[%s2992_s29 + $0x60] sm:$0xff] %v1030_v55  ;;  %v930_v59 = vadd.f32 %v2985_v12, %v929_v58  ;;  %2223 = vmatprep.mubr.f32.mxu0 %v1030_v55  ;;  %2444 = vmatprep.subr.bf16.mxu1 %v2433_v49 }
 0x1e8   : > { %v1033_v22 = vmax.f32 %v935_v57, 0.0  ;;  %2224 = vmatmul.mubr.f32.gmra.mrb[44].mxu0 %v1031_v54  ;;  %2452 = vmatpush3.bf16.msra.mxu1 %v2433_v49 }
 0x1e9   : > { %v1032_v60 = vmax.f32 %v930_v59, 0.0  ;;  %v2151_v61 = vpop.f32.mrb[16].mxu1  ;;  %2432 = vmatpush3.bf16.msra.mxu0 %v2974_v11 }
 0x1ea   : > { %1065 = vst [vmem:[%s2992_s29 + $0x78] sm:$0xff] %v1033_v22  ;;  %v945_v62 = vadd.f32 %v2151_v61, %v2985_v12  ;;  %v939_v63 = vpop.f32.mrb[17].mxu1  ;;  %2434 = vmatprep.subr.bf16.mxu0 %v2433_v49 }
 0x1eb   : > { %1064 = vst [vmem:[%s2992_s29 + $0x70] sm:$0xff] %v1032_v60  ;;  %v940_v0 = vadd.f32 %v2985_v12, %v939_v63  ;;  %2226 = vmatprep.mubr.f32.mxu0 %v1032_v60 }
 0x1ec   : > { %v1035_v1 = vmax.f32 %v945_v62, 0.0  ;;  %2227 = vmatmul.mubr.f32.gmra.mrb[46].mxu0 %v1033_v22 }
 0x1ed   : > { %v1034_v2 = vmax.f32 %v940_v0, 0.0  ;;  %v2154_v3 = vpop.f32.mrb[18].mxu1  ;;  %2436 = vmatpush3.bf16.msra.mxu0 %v2433_v49 }
 0x1ee   : > { %1067 = vst [vmem:[%s2992_s29 + $0x88] sm:$0xff] %v1035_v1  ;;  %v955_v4 = vadd.f32 %v2154_v3, %v2985_v12  ;;  %v949_v5 = vpop.f32.mrb[19].mxu1 }
 0x1ef   : > { %1066 = vst [vmem:[%s2992_s29 + $0x80] sm:$0xff] %v1034_v2  ;;  %v950_v6 = vadd.f32 %v2985_v12, %v949_v5  ;;  %2229 = vmatprep.mubr.f32.mxu0 %v1034_v2 }
 0x1f0   : > { %v1037_v7 = vmax.f32 %v955_v4, 0.0  ;;  %2230 = vmatmul.mubr.f32.gmra.mrb[48].mxu0 %v1035_v1 }
 0x1f1   : > { %v1036_v8 = vmax.f32 %v950_v6, 0.0  ;;  %v2157_v9 = vpop.f32.mrb[20].mxu1 }
 0x1f2   : > { %1069 = vst [vmem:[%s2992_s29 + $0x98] sm:$0xff] %v1037_v7  ;;  %v965_v10 = vadd.f32 %v2157_v9, %v2985_v12  ;;  %v959_v11 = vpop.f32.mrb[21].mxu1 }
 0x1f3   : > { %1068 = vst [vmem:[%s2992_s29 + $0x90] sm:$0xff] %v1036_v8  ;;  %v960_v13 = vadd.f32 %v2985_v12, %v959_v11  ;;  %2232 = vmatprep.mubr.f32.mxu0 %v1036_v8 }
 0x1f4   : > { %v1039_v14 = vmax.f32 %v965_v10, 0.0  ;;  %2233 = vmatmul.mubr.f32.gmra.mrb[50].mxu0 %v1037_v7 }
 0x1f5   : > { %v1038_v15 = vmax.f32 %v960_v13, 0.0  ;;  %v2160_v16 = vpop.f32.mrb[22].mxu1 }
 0x1f6   : > { %1071 = vst [vmem:[%s2992_s29 + $0xa8] sm:$0xff] %v1039_v14  ;;  %v975_v17 = vadd.f32 %v2160_v16, %v2985_v12  ;;  %v969_v18 = vpop.f32.mrb[23].mxu1 }
 0x1f7   : > { %1070 = vst [vmem:[%s2992_s29 + $0xa0] sm:$0xff] %v1038_v15  ;;  %v970_v19 = vadd.f32 %v2985_v12, %v969_v18  ;;  %2235 = vmatprep.mubr.f32.mxu0 %v1038_v15 }
 0x1f8   : > { %v1041_v20 = vmax.f32 %v975_v17, 0.0  ;;  %2236 = vmatmul.mubr.f32.gmra.mrb[52].mxu0 %v1039_v14 }
 0x1f9   : > { %v1040_v21 = vmax.f32 %v970_v19, 0.0  ;;  %v2163_v23 = vpop.f32.mrb[24].mxu1 }
 0x1fa   : > { %1073 = vst [vmem:[%s2992_s29 + $0xb8] sm:$0xff] %v1041_v20  ;;  %v985_v24 = vadd.f32 %v2163_v23, %v2985_v12  ;;  %v979_v25 = vpop.f32.mrb[25].mxu1 }
 0x1fb   : > { %1072 = vst [vmem:[%s2992_s29 + $0xb0] sm:$0xff] %v1040_v21  ;;  %v980_v26 = vadd.f32 %v2985_v12, %v979_v25  ;;  %2238 = vmatprep.mubr.f32.mxu0 %v1040_v21 }
 0x1fc   : > { %v1043_v27 = vmax.f32 %v985_v24, 0.0  ;;  %2239 = vmatmul.mubr.f32.gmra.mrb[54].mxu0 %v1041_v20 }
 0x1fd   : > { %v1042_v28 = vmax.f32 %v980_v26, 0.0  ;;  %v2166_v29 = vpop.f32.mrb[26].mxu1 }
 0x1fe   : > { %1075 = vst [vmem:[%s2992_s29 + $0xc8] sm:$0xff] %v1043_v27  ;;  %v995_v30 = vadd.f32 %v2166_v29, %v2985_v12  ;;  %v989_v31 = vpop.f32.mrb[27].mxu1 }
 0x1ff   : > { %1074 = vst [vmem:[%s2992_s29 + $0xc0] sm:$0xff] %v1042_v28  ;;  %v990_v32 = vadd.f32 %v2985_v12, %v989_v31  ;;  %2241 = vmatprep.mubr.f32.mxu0 %v1042_v28 }
 0x200   : > { %v1045_v33 = vmax.f32 %v995_v30, 0.0  ;;  %2242 = vmatmul.mubr.f32.gmra.mrb[56].mxu0 %v1043_v27 }
 0x201   : > { %v1044_v34 = vmax.f32 %v990_v32, 0.0  ;;  %v2169_v35 = vpop.f32.mrb[28].mxu1 }
 0x202   : > { %1077 = vst [vmem:[%s2992_s29 + $0xd8] sm:$0xff] %v1045_v33  ;;  %v1005_v36 = vadd.f32 %v2169_v35, %v2985_v12  ;;  %v999_v37 = vpop.f32.mrb[29].mxu1 }
 0x203   : > { %1076 = vst [vmem:[%s2992_s29 + $0xd0] sm:$0xff] %v1044_v34  ;;  %v1000_v38 = vadd.f32 %v2985_v12, %v999_v37  ;;  %2244 = vmatprep.mubr.f32.mxu0 %v1044_v34 }
 0x204   : > { %v1047_v39 = vmax.f32 %v1005_v36, 0.0  ;;  %2245 = vmatmul.mubr.f32.gmra.mrb[58].mxu0 %v1045_v33 }
 0x205   : > { %v1046_v40 = vmax.f32 %v1000_v38, 0.0  ;;  %v2172_v41 = vpop.f32.mrb[30].mxu1 }
 0x206   : > { %1079 = vst [vmem:[%s2992_s29 + $0xe8] sm:$0xff] %v1047_v39  ;;  %v1015_v42 = vadd.f32 %v2172_v41, %v2985_v12  ;;  %v1009_v43 = vpop.f32.mrb[31].mxu1 }
 0x207   : > { %1078 = vst [vmem:[%s2992_s29 + $0xe0] sm:$0xff] %v1046_v40  ;;  %v1010_v44 = vadd.f32 %v2985_v12, %v1009_v43  ;;  %2247 = vmatprep.mubr.f32.mxu0 %v1046_v40  ;;  %v3075_v12 = vld [vmem:[%s3280_s6] ss:$0 sm:$0xff] }
 0x208   : > { %v1049_v45 = vmax.f32 %v1015_v42, 0.0  ;;  %2248 = vmatmul.mubr.f32.gmra.mrb[60].mxu0 %v1047_v39 }
 0x209   : > { %v1048_v46 = vmax.f32 %v1010_v44, 0.0 }
 0x20a   : > { %1081 = vst [vmem:[%s2992_s29 + $0xf8] sm:$0xff] %v1049_v45 }
 0x20b   : > { %1080 = vst [vmem:[%s2992_s29 + $0xf0] sm:$0xff] %v1048_v46  ;;  %2250 = vmatprep.mubr.f32.mxu0 %v1048_v46  ;;  %s2505_s29 = scalar_lea.vmem %s2504_s27, 8192 }
 0x20c   : > { %2251 = vmatmul.mubr.f32.gmra.mrb[62].mxu0 %v1049_v45  ;;  %p2507_p1 = scmp.lt.s32.totalorder %s2505_s29, %s2499_s18 }
 0x20e   : > { %p2508_p2 = por %p2507_p1, %p2506_p0 }
 0x210   : > { %p2509_p3 = pnand %p2508_p2, %p2502_p13 }
 0x2a3   : > { %v2207_v50 = vpop.f32.mrb[32].mxu0 }
 0x2a4   : > { %v1177_v51 = vadd.f32 %v2207_v50, %v3075_v12  ;;  %v1171_v52 = vpop.f32.mrb[33].mxu0 }
 0x2a5   : > { %v1172_v53 = vadd.f32 %v3075_v12, %v1171_v52 }
 0x2a6   : > { %v1331_v56 = vmax.f32 %v1177_v51, 0.0 }
 0x2a7   : > { %v1330_v54 = vmax.f32 %v1172_v53, 0.0  ;;  %v2210_v55 = vpop.f32.mrb[34].mxu0 }
 0x2a8   : > { %v1187_v57 = vadd.f32 %v2210_v55, %v3075_v12  ;;  %v1181_v58 = vpop.f32.mrb[35].mxu0 }
 0x2a9   : > { %v1182_v59 = vadd.f32 %v3075_v12, %v1181_v58  ;;  %2285 = vmatprep.mubr.f32.mxu0 %v1330_v54 }
 0x2aa   : > { %2286 = vmatmul.mubr.f32.vlgmr.msra.gmra.mrb[64].mxu0 %v1331_v56  ;;  %v1333_v61 = vmax.f32 %v1187_v57, 0.0 }
 0x2ab   : > { %v1332_v22 = vmax.f32 %v1182_v59, 0.0  ;;  %v2213_v60 = vpop.f32.mrb[36].mxu0 }
 0x2ac   : > { %v1197_v62 = vadd.f32 %v2213_v60, %v3075_v12  ;;  %v1191_v63 = vpop.f32.mrb[37].mxu0 }
 0x2ad   : > { %v1192_v0 = vadd.f32 %v3075_v12, %v1191_v63  ;;  %2288 = vmatprep.mubr.f32.mxu0 %v1332_v22 }
 0x2ae   : > { %2289 = vmatmul.mubr.f32.gmra.mrb[66].mxu0 %v1333_v61  ;;  %v1335_v3 = vmax.f32 %v1197_v62, 0.0 }
 0x2af   : > { %v1334_v1 = vmax.f32 %v1192_v0, 0.0  ;;  %v2216_v2 = vpop.f32.mrb[38].mxu0 }
 0x2b0   : > { %v1207_v4 = vadd.f32 %v2216_v2, %v3075_v12  ;;  %v1201_v5 = vpop.f32.mrb[39].mxu0 }
 0x2b1   : > { %v1202_v6 = vadd.f32 %v3075_v12, %v1201_v5  ;;  %2291 = vmatprep.mubr.f32.mxu0 %v1334_v1 }
 0x2b2   : > { %2292 = vmatmul.mubr.f32.gmra.mrb[68].mxu0 %v1335_v3  ;;  %v1337_v9 = vmax.f32 %v1207_v4, 0.0 }
 0x2b3   : > { %v1336_v7 = vmax.f32 %v1202_v6, 0.0  ;;  %v2219_v8 = vpop.f32.mrb[40].mxu0 }
 0x2b4   : > { %v1217_v10 = vadd.f32 %v2219_v8, %v3075_v12  ;;  %v1211_v11 = vpop.f32.mrb[41].mxu0 }
 0x2b5   : > { %v1212_v13 = vadd.f32 %v3075_v12, %v1211_v11  ;;  %2294 = vmatprep.mubr.f32.mxu1 %v1336_v7 }
 0x2b6   : > { %2295 = vmatmul.mubr.f32.vlgmr.msra.gmra.mrb[32].mxu1 %v1337_v9  ;;  %v1339_v16 = vmax.f32 %v1217_v10, 0.0 }
 0x2b7   : > { %v1338_v14 = vmax.f32 %v1212_v13, 0.0  ;;  %v2222_v15 = vpop.f32.mrb[42].mxu0 }
 0x2b8   : > { %v1227_v17 = vadd.f32 %v2222_v15, %v3075_v12  ;;  %v1221_v18 = vpop.f32.mrb[43].mxu0 }
 0x2b9   : > { %v1222_v19 = vadd.f32 %v3075_v12, %v1221_v18  ;;  %2297 = vmatprep.mubr.f32.mxu1 %v1338_v14 }
 0x2ba   : > { %2298 = vmatmul.mubr.f32.gmra.mrb[34].mxu1 %v1339_v16  ;;  %v1341_v23 = vmax.f32 %v1227_v17, 0.0 }
 0x2bb   : > { %v1340_v20 = vmax.f32 %v1222_v19, 0.0  ;;  %v2225_v21 = vpop.f32.mrb[44].mxu0 }
 0x2bc   : > { %v1237_v24 = vadd.f32 %v2225_v21, %v3075_v12  ;;  %v1231_v25 = vpop.f32.mrb[45].mxu0 }
 0x2bd   : > { %v1232_v26 = vadd.f32 %v3075_v12, %v1231_v25  ;;  %2300 = vmatprep.mubr.f32.mxu1 %v1340_v20 }
 0x2be   : > { %2301 = vmatmul.mubr.f32.gmra.mrb[36].mxu1 %v1341_v23  ;;  %v1343_v29 = vmax.f32 %v1237_v24, 0.0 }
 0x2bf   : > { %v1342_v27 = vmax.f32 %v1232_v26, 0.0  ;;  %v2228_v28 = vpop.f32.mrb[46].mxu0 }
 0x2c0   : > { %v1247_v30 = vadd.f32 %v2228_v28, %v3075_v12  ;;  %v1241_v31 = vpop.f32.mrb[47].mxu0 }
 0x2c1   : > { %v1242_v32 = vadd.f32 %v3075_v12, %v1241_v31  ;;  %2303 = vmatprep.mubr.f32.mxu1 %v1342_v27 }
 0x2c2   : > { %2304 = vmatmul.mubr.f32.gmra.mrb[38].mxu1 %v1343_v29  ;;  %v1345_v35 = vmax.f32 %v1247_v30, 0.0 }
 0x2c3   : > { %v1344_v33 = vmax.f32 %v1242_v32, 0.0  ;;  %v2231_v34 = vpop.f32.mrb[48].mxu0 }
 0x2c4   : > { %v1257_v36 = vadd.f32 %v2231_v34, %v3075_v12  ;;  %v1251_v37 = vpop.f32.mrb[49].mxu0 }
 0x2c5   : > { %v1252_v38 = vadd.f32 %v3075_v12, %v1251_v37  ;;  %2306 = vmatprep.mubr.f32.mxu1 %v1344_v33 }
 0x2c6   : > { %2307 = vmatmul.mubr.f32.gmra.mrb[40].mxu1 %v1345_v35  ;;  %v1347_v41 = vmax.f32 %v1257_v36, 0.0 }
 0x2c7   : > { %v1346_v39 = vmax.f32 %v1252_v38, 0.0  ;;  %v2234_v40 = vpop.f32.mrb[50].mxu0 }
 0x2c8   : > { %v1267_v42 = vadd.f32 %v2234_v40, %v3075_v12  ;;  %v1261_v43 = vpop.f32.mrb[51].mxu0 }
 0x2c9   : > { %v1262_v44 = vadd.f32 %v3075_v12, %v1261_v43  ;;  %2309 = vmatprep.mubr.f32.mxu1 %v1346_v39 }
 0x2ca   : > { %2310 = vmatmul.mubr.f32.gmra.mrb[42].mxu1 %v1347_v41  ;;  %v1349_v47 = vmax.f32 %v1267_v42, 0.0 }
 0x2cb   : > { %v1348_v45 = vmax.f32 %v1262_v44, 0.0  ;;  %v2237_v46 = vpop.f32.mrb[52].mxu0 }
 0x2cc   : > { %v1277_v48 = vadd.f32 %v2237_v46, %v3075_v12  ;;  %v1271_v49 = vpop.f32.mrb[53].mxu0 }
 0x2cd   : > { %v1272_v50 = vadd.f32 %v3075_v12, %v1271_v49  ;;  %2312 = vmatprep.mubr.f32.mxu1 %v1348_v45 }
 0x2ce   : > { %2313 = vmatmul.mubr.f32.gmra.mrb[44].mxu1 %v1349_v47  ;;  %v1351_v53 = vmax.f32 %v1277_v48, 0.0 }
 0x2cf   : > { %v1350_v51 = vmax.f32 %v1272_v50, 0.0  ;;  %v2240_v52 = vpop.f32.mrb[54].mxu0 }
 0x2d0   : > { %v1287_v54 = vadd.f32 %v2240_v52, %v3075_v12  ;;  %v1281_v55 = vpop.f32.mrb[55].mxu0 }
 0x2d1   : > { %v1282_v56 = vadd.f32 %v3075_v12, %v1281_v55  ;;  %2315 = vmatprep.mubr.f32.mxu1 %v1350_v51 }
 0x2d2   : > { %2316 = vmatmul.mubr.f32.gmra.mrb[46].mxu1 %v1351_v53  ;;  %v1353_v59 = vmax.f32 %v1287_v54, 0.0 }
 0x2d3   : > { %v1352_v57 = vmax.f32 %v1282_v56, 0.0  ;;  %v2243_v58 = vpop.f32.mrb[56].mxu0 }
 0x2d4   : > { %v1297_v22 = vadd.f32 %v2243_v58, %v3075_v12  ;;  %v1291_v60 = vpop.f32.mrb[57].mxu0 }
 0x2d5   : > { %v1292_v61 = vadd.f32 %v3075_v12, %v1291_v60  ;;  %2318 = vmatprep.mubr.f32.mxu1 %v1352_v57 }
 0x2d6   : > { %2319 = vmatmul.mubr.f32.gmra.mrb[48].mxu1 %v1353_v59  ;;  %v1355_v0 = vmax.f32 %v1297_v22, 0.0 }
 0x2d7   : > { %v1354_v62 = vmax.f32 %v1292_v61, 0.0  ;;  %v2246_v63 = vpop.f32.mrb[58].mxu0 }
 0x2d8   : > { %v1307_v1 = vadd.f32 %v2246_v63, %v3075_v12  ;;  %v1301_v2 = vpop.f32.mrb[59].mxu0 }
 0x2d9   : > { %v1302_v3 = vadd.f32 %v3075_v12, %v1301_v2  ;;  %2321 = vmatprep.mubr.f32.mxu1 %v1354_v62 }
 0x2da   : > { %2322 = vmatmul.mubr.f32.gmra.mrb[50].mxu1 %v1355_v0  ;;  %v1357_v6 = vmax.f32 %v1307_v1, 0.0 }
 0x2db   : > { %v1356_v4 = vmax.f32 %v1302_v3, 0.0  ;;  %v2249_v5 = vpop.f32.mrb[60].mxu0 }
 0x2dc   : > { %v1317_v7 = vadd.f32 %v2249_v5, %v3075_v12  ;;  %v1311_v8 = vpop.f32.mrb[61].mxu0 }
 0x2dd   : > { %v1312_v9 = vadd.f32 %v3075_v12, %v1311_v8  ;;  %2324 = vmatprep.mubr.f32.mxu1 %v1356_v4 }
 0x2de   : > { %2325 = vmatmul.mubr.f32.gmra.mrb[52].mxu1 %v1357_v6  ;;  %v1359_v13 = vmax.f32 %v1317_v7, 0.0 }
 0x2df   : > { %v1358_v10 = vmax.f32 %v1312_v9, 0.0  ;;  %v2252_v11 = vpop.f32.mrb[62].mxu0 }
 0x2e0   : > { %v1327_v14 = vadd.f32 %v2252_v11, %v3075_v12  ;;  %v1321_v15 = vpop.f32.mrb[63].mxu0 }
 0x2e1   : > { %v1322_v16 = vadd.f32 %v3075_v12, %v1321_v15  ;;  %2327 = vmatprep.mubr.f32.mxu1 %v1358_v10 }
 0x2e2   : > { %2328 = vmatmul.mubr.f32.gmra.mrb[54].mxu1 %v1359_v13  ;;  %v1361_v18 = vmax.f32 %v1327_v14, 0.0 }
 0x2e3   : > { %v1360_v17 = vmax.f32 %v1322_v16, 0.0 }
 0x2e5   : > { %2330 = vmatprep.mubr.f32.mxu1 %v1360_v17 }
 0x2e6   : > { %2331 = vmatmul.mubr.f32.gmra.mrb[56].mxu1 %v1361_v18 }
 0x2e7   : > { %2512 = shalt.err (!%p2509_p3)
}
 0x2e8   : > { %s2513_s30 = scalar_lea.hbm %s3116_s12, 4096  ;;  %s2517_s20 = scalar_lea.hbm %s3283_s9, 8192 }
 0x2e9   : > { %p2514_p4 = scmp.ne.s32.totalorder %s3116_s12, %s2513_s30  ;;  %p2518_p9 = scmp.lt.u32.totalorder %s3116_s12, %s3283_s9 }
 0x2ea   : > { %p2519_p10 = scmp.lt.u32.totalorder %s2517_s20, %s2513_s30  ;;  %p2521_p12 = scmp.lt.u32.totalorder %s2513_s30, %s3116_s12 }
 0x2eb   : > { %p2515_p7 = pnand %p2514_p4, %p2692_p5 }
 0x2ec   : > { %p2520_p11 = por %p2519_p10, %p2518_p9 }
 0x2ed   : > { %p2516_p8 = pneg %p2515_p7 }
 0x2ee   : > { %p2522_p13 = por %p2521_p12, %p2520_p11 }
 0x2f0   : > { %p2523_p0 = pnand %p2522_p13, %p2516_p8 }
 0x2f2   : > { %2526 = shalt.err (!%p2523_p0)
}
 0x2f3   : > { %s3287_s18 = smov 128   ;;  %s3288_s29 = smov 8   ;;  %v3150_v12 = vld [vmem:[%s3282_s8] ss:$0 sm:$0xff] }
 0x2f4   : > { %s3291_s25 = scalar_lea.sflag [#allocation3], %s2980_s21  ;;  %s3292_s30 = sshll.u32 %s2980_s21, 8 }
 0x2f5   : > { %2453 = dma.vmem_to_hbm [thread:$0]  (%p2692_p5), %s3118_s26, 4096, %s3116_s12, %s3291_s25, %s3287_s18, %s3287_s18, %s3288_s29  }
 0x2f6   : > { %s3156_s20 = scalar_lea.vmem [#allocation4], %s3292_s30  ;;  %s3293_s12 = sshll.u32 %s2675_s17, 12 }
 0x2f7   : > { %s1709_s26 = sshll.u32 %s3156_s20, 4  ;;  %s3224_s28 = scalar_lea.hbm %s3284_s10, %s3293_s12  ;;  %s3226_s26 = int_to_ptr.vmem [resolvable:$true] %s1709_s26 }
 0x2f8   : > { %s1680_s11 = scalar_lea.sflag [#allocation5], %s2980_s21  ;;  %s2527_s30 = scalar_lea.vmem %s3226_s26, 4096 }
 0x2f9   : > { %p2528_p1 = scmp.ne.s32.totalorder %s3226_s26, %s2527_s30  ;;  %s2598_s18 = smov [#allocation4]  }
 0x2fa   : > { %s2531_s17 = sshll.u32 %s2598_s18, 4  ;;  %s2532_s17 = int_to_ptr.vmem [resolvable:$false] %s2531_s17 }
 0x2fb   : > { %p2529_p2 = pnand %p2528_p1, %p2692_p5  ;;  %s2533_s29 = scalar_lea.vmem %s2532_s17, 8192 }
 0x2fc   : > { %p2534_p4 = scmp.lt.s32.totalorder %s3226_s26, %s2532_s17  ;;  %p2535_p7 = scmp.lt.s32.totalorder %s2533_s29, %s2527_s30 }
 0x2fd   : > { %p2530_p3 = pneg %p2529_p2 }
 0x2fe   : > { %p2536_p8 = por %p2535_p7, %p2534_p4 }
 0x300   : > { %p2537_p9 = pnand %p2536_p8, %p2530_p3 }
 0x37d   : > { %v2287_v19 = vpop.f32.mrb[64].mxu0 }
 0x37e   : > { %v1457_v20 = vadd.f32 %v2287_v19, %v3150_v12  ;;  %v1451_v21 = vpop.f32.mrb[65].mxu0 }
 0x37f   : > { %v1452_v23 = vadd.f32 %v3150_v12, %v1451_v21 }
 0x380   : > { %v1611_v24 = vmax.f32 %v1457_v20, 0.0 }
 0x381   : > { %v1610_v25 = vmax.f32 %v1452_v23, 0.0  ;;  %v2290_v26 = vpop.f32.mrb[66].mxu0 }
 0x382   : > { %1643 = vst [vmem:[%s3156_s20 + $0x8] sm:$0xff] %v1611_v24  ;;  %v1467_v27 = vadd.f32 %v2290_v26, %v3150_v12  ;;  %v1461_v28 = vpop.f32.mrb[67].mxu0 }
 0x383   : > { %1642 = vst [vmem:[%s3156_s20] sm:$0xff] %v1610_v25  ;;  %v1462_v29 = vadd.f32 %v3150_v12, %v1461_v28 }
 0x384   : > { %v1613_v30 = vmax.f32 %v1467_v27, 0.0 }
 0x385   : > { %v1612_v31 = vmax.f32 %v1462_v29, 0.0  ;;  %v2293_v32 = vpop.f32.mrb[68].mxu0 }
 0x386   : > { %1645 = vst [vmem:[%s3156_s20 + $0x18] sm:$0xff] %v1613_v30  ;;  %v1477_v33 = vadd.f32 %v2293_v32, %v3150_v12  ;;  %v1471_v34 = vpop.f32.mrb[69].mxu0 }
 0x387   : > { %1644 = vst [vmem:[%s3156_s20 + $0x10] sm:$0xff] %v1612_v31  ;;  %v1472_v35 = vadd.f32 %v3150_v12, %v1471_v34 }
 0x388   : > { %v1615_v36 = vmax.f32 %v1477_v33, 0.0 }
 0x389   : > { %v1614_v37 = vmax.f32 %v1472_v35, 0.0  ;;  %v2296_v38 = vpop.f32.mrb[32].mxu1 }
 0x38a   : > { %1647 = vst [vmem:[%s3156_s20 + $0x28] sm:$0xff] %v1615_v36  ;;  %v1487_v39 = vadd.f32 %v2296_v38, %v3150_v12  ;;  %v1481_v40 = vpop.f32.mrb[33].mxu1 }
 0x38b   : > { %1646 = vst [vmem:[%s3156_s20 + $0x20] sm:$0xff] %v1614_v37  ;;  %v1482_v41 = vadd.f32 %v3150_v12, %v1481_v40 }
 0x38c   : > { %v1617_v42 = vmax.f32 %v1487_v39, 0.0 }
 0x38d   : > { %v1616_v43 = vmax.f32 %v1482_v41, 0.0  ;;  %v2299_v44 = vpop.f32.mrb[34].mxu1 }
 0x38e   : > { %1649 = vst [vmem:[%s3156_s20 + $0x38] sm:$0xff] %v1617_v42  ;;  %v1497_v45 = vadd.f32 %v2299_v44, %v3150_v12  ;;  %v1491_v46 = vpop.f32.mrb[35].mxu1 }
 0x38f   : > { %1648 = vst [vmem:[%s3156_s20 + $0x30] sm:$0xff] %v1616_v43  ;;  %v1492_v47 = vadd.f32 %v3150_v12, %v1491_v46 }
 0x390   : > { %v1619_v48 = vmax.f32 %v1497_v45, 0.0 }
 0x391   : > { %v1618_v49 = vmax.f32 %v1492_v47, 0.0  ;;  %v2302_v50 = vpop.f32.mrb[36].mxu1 }
 0x392   : > { %1651 = vst [vmem:[%s3156_s20 + $0x48] sm:$0xff] %v1619_v48  ;;  %v1507_v51 = vadd.f32 %v2302_v50, %v3150_v12  ;;  %v1501_v52 = vpop.f32.mrb[37].mxu1 }
 0x393   : > { %1650 = vst [vmem:[%s3156_s20 + $0x40] sm:$0xff] %v1618_v49  ;;  %v1502_v53 = vadd.f32 %v3150_v12, %v1501_v52 }
 0x394   : > { %v1621_v54 = vmax.f32 %v1507_v51, 0.0 }
 0x395   : > { %v1620_v55 = vmax.f32 %v1502_v53, 0.0  ;;  %v2305_v56 = vpop.f32.mrb[38].mxu1 }
 0x396   : > { %1653 = vst [vmem:[%s3156_s20 + $0x58] sm:$0xff] %v1621_v54  ;;  %v1517_v57 = vadd.f32 %v2305_v56, %v3150_v12  ;;  %v1511_v58 = vpop.f32.mrb[39].mxu1 }
 0x397   : > { %1652 = vst [vmem:[%s3156_s20 + $0x50] sm:$0xff] %v1620_v55  ;;  %v1512_v59 = vadd.f32 %v3150_v12, %v1511_v58 }
 0x398   : > { %v1623_v22 = vmax.f32 %v1517_v57, 0.0 }
 0x399   : > { %v1622_v60 = vmax.f32 %v1512_v59, 0.0  ;;  %v2308_v61 = vpop.f32.mrb[40].mxu1 }
 0x39a   : > { %1655 = vst [vmem:[%s3156_s20 + $0x68] sm:$0xff] %v1623_v22  ;;  %v1527_v62 = vadd.f32 %v2308_v61, %v3150_v12  ;;  %v1521_v63 = vpop.f32.mrb[41].mxu1 }
 0x39b   : > { %1654 = vst [vmem:[%s3156_s20 + $0x60] sm:$0xff] %v1622_v60  ;;  %v1522_v0 = vadd.f32 %v3150_v12, %v1521_v63 }
 0x39c   : > { %v1625_v1 = vmax.f32 %v1527_v62, 0.0 }
 0x39d   : > { %v1624_v2 = vmax.f32 %v1522_v0, 0.0  ;;  %v2311_v3 = vpop.f32.mrb[42].mxu1 }
 0x39e   : > { %1657 = vst [vmem:[%s3156_s20 + $0x78] sm:$0xff] %v1625_v1  ;;  %v1537_v4 = vadd.f32 %v2311_v3, %v3150_v12  ;;  %v1531_v5 = vpop.f32.mrb[43].mxu1 }
 0x39f   : > { %1656 = vst [vmem:[%s3156_s20 + $0x70] sm:$0xff] %v1624_v2  ;;  %v1532_v6 = vadd.f32 %v3150_v12, %v1531_v5 }
 0x3a0   : > { %v1627_v7 = vmax.f32 %v1537_v4, 0.0 }
 0x3a1   : > { %v1626_v8 = vmax.f32 %v1532_v6, 0.0  ;;  %v2314_v9 = vpop.f32.mrb[44].mxu1 }
 0x3a2   : > { %1659 = vst [vmem:[%s3156_s20 + $0x88] sm:$0xff] %v1627_v7  ;;  %v1547_v10 = vadd.f32 %v2314_v9, %v3150_v12  ;;  %v1541_v11 = vpop.f32.mrb[45].mxu1 }
 0x3a3   : > { %1658 = vst [vmem:[%s3156_s20 + $0x80] sm:$0xff] %v1626_v8  ;;  %v1542_v13 = vadd.f32 %v3150_v12, %v1541_v11 }
 0x3a4   : > { %v1629_v14 = vmax.f32 %v1547_v10, 0.0 }
 0x3a5   : > { %v1628_v15 = vmax.f32 %v1542_v13, 0.0  ;;  %v2317_v16 = vpop.f32.mrb[46].mxu1 }
 0x3a6   : > { %1661 = vst [vmem:[%s3156_s20 + $0x98] sm:$0xff] %v1629_v14  ;;  %v1557_v17 = vadd.f32 %v2317_v16, %v3150_v12  ;;  %v1551_v18 = vpop.f32.mrb[47].mxu1 }
 0x3a7   : > { %1660 = vst [vmem:[%s3156_s20 + $0x90] sm:$0xff] %v1628_v15  ;;  %v1552_v19 = vadd.f32 %v3150_v12, %v1551_v18 }
 0x3a8   : > { %v1631_v20 = vmax.f32 %v1557_v17, 0.0 }
 0x3a9   : > { %v1630_v21 = vmax.f32 %v1552_v19, 0.0  ;;  %v2320_v23 = vpop.f32.mrb[48].mxu1 }
 0x3aa   : > { %1663 = vst [vmem:[%s3156_s20 + $0xa8] sm:$0xff] %v1631_v20  ;;  %v1567_v24 = vadd.f32 %v2320_v23, %v3150_v12  ;;  %v1561_v25 = vpop.f32.mrb[49].mxu1 }
 0x3ab   : > { %1662 = vst [vmem:[%s3156_s20 + $0xa0] sm:$0xff] %v1630_v21  ;;  %v1562_v26 = vadd.f32 %v3150_v12, %v1561_v25 }
 0x3ac   : > { %v1633_v27 = vmax.f32 %v1567_v24, 0.0 }
 0x3ad   : > { %v1632_v28 = vmax.f32 %v1562_v26, 0.0  ;;  %v2323_v29 = vpop.f32.mrb[50].mxu1 }
 0x3ae   : > { %1665 = vst [vmem:[%s3156_s20 + $0xb8] sm:$0xff] %v1633_v27  ;;  %v1577_v30 = vadd.f32 %v2323_v29, %v3150_v12  ;;  %v1571_v31 = vpop.f32.mrb[51].mxu1 }
 0x3af   : > { %1664 = vst [vmem:[%s3156_s20 + $0xb0] sm:$0xff] %v1632_v28  ;;  %v1572_v32 = vadd.f32 %v3150_v12, %v1571_v31 }
 0x3b0   : > { %v1635_v33 = vmax.f32 %v1577_v30, 0.0 }
 0x3b1   : > { %v1634_v34 = vmax.f32 %v1572_v32, 0.0  ;;  %v2326_v35 = vpop.f32.mrb[52].mxu1 }
 0x3b2   : > { %1667 = vst [vmem:[%s3156_s20 + $0xc8] sm:$0xff] %v1635_v33  ;;  %v1587_v36 = vadd.f32 %v2326_v35, %v3150_v12  ;;  %v1581_v37 = vpop.f32.mrb[53].mxu1 }
 0x3b3   : > { %1666 = vst [vmem:[%s3156_s20 + $0xc0] sm:$0xff] %v1634_v34  ;;  %v1582_v38 = vadd.f32 %v3150_v12, %v1581_v37 }
 0x3b4   : > { %v1637_v39 = vmax.f32 %v1587_v36, 0.0 }
 0x3b5   : > { %v1636_v40 = vmax.f32 %v1582_v38, 0.0  ;;  %v2329_v41 = vpop.f32.mrb[54].mxu1 }
 0x3b6   : > { %1669 = vst [vmem:[%s3156_s20 + $0xd8] sm:$0xff] %v1637_v39  ;;  %v1597_v42 = vadd.f32 %v2329_v41, %v3150_v12  ;;  %v1591_v43 = vpop.f32.mrb[55].mxu1 }
 0x3b7   : > { %1668 = vst [vmem:[%s3156_s20 + $0xd0] sm:$0xff] %v1636_v40  ;;  %v1592_v44 = vadd.f32 %v3150_v12, %v1591_v43 }
 0x3b8   : > { %v1639_v45 = vmax.f32 %v1597_v42, 0.0 }
 0x3b9   : > { %v1638_v46 = vmax.f32 %v1592_v44, 0.0  ;;  %v2332_v47 = vpop.f32.mrb[56].mxu1 }
 0x3ba   : > { %1671 = vst [vmem:[%s3156_s20 + $0xe8] sm:$0xff] %v1639_v45  ;;  %v1607_v48 = vadd.f32 %v2332_v47, %v3150_v12  ;;  %v1601_v49 = vpop.f32.mrb[57].mxu1 }
 0x3bb   : > { %1670 = vst [vmem:[%s3156_s20 + $0xe0] sm:$0xff] %v1638_v46  ;;  %v1602_v50 = vadd.f32 %v3150_v12, %v1601_v49 }
 0x3bc   : > { %v1641_v51 = vmax.f32 %v1607_v48, 0.0 }
 0x3bd   : > { %v1640_v52 = vmax.f32 %v1602_v50, 0.0 }
 0x3be   : > { %1673 = vst [vmem:[%s3156_s20 + $0xf8] sm:$0xff] %v1641_v51 }
 0x3bf   : > { %1672 = vst [vmem:[%s3156_s20 + $0xf0] sm:$0xff] %v1640_v52 }
 0x3c0   : > { %2540 = shalt.err (!%p2537_p9)
}
 0x3c1   : > { %s2541_s20 = scalar_lea.hbm %s3224_s28, 4096  ;;  %s2545_s18 = scalar_lea.hbm %s3284_s10, 8192 }
 0x3c2   : > { %p2542_p10 = scmp.ne.s32.totalorder %s3224_s28, %s2541_s20  ;;  %p2546_p13 = scmp.lt.u32.totalorder %s3224_s28, %s3284_s10 }
 0x3c3   : > { %p2547_p0 = scmp.lt.u32.totalorder %s2545_s18, %s2541_s20  ;;  %p2549_p2 = scmp.lt.u32.totalorder %s2541_s20, %s3224_s28 }
 0x3c4   : > { %p2543_p11 = pnand %p2542_p10, %p2692_p5 }
 0x3c5   : > { %p2548_p1 = por %p2547_p0, %p2546_p13 }
 0x3c6   : > { %p2544_p12 = pneg %p2543_p11 }
 0x3c7   : > { %p2550_p3 = por %p2549_p2, %p2548_p1 }
 0x3c9   : > { %p2551_p4 = pnand %p2550_p3, %p2544_p12 }
 0x3cb   : > { %2554 = shalt.err (!%p2551_p4)
}
 0x3cc   : > { %s3294_s29 = smov 8   ;;  %s3295_s30 = smov 128  }
 0x3cd   : > { %2454 = dma.vmem_to_hbm [thread:$0]  (%p2692_p5), %s3226_s26, 4096, %s3224_s28, %s1680_s11, %s3295_s30, %s3295_s30, %s3294_s29  }
 0x3ce PF: > { %p2464_p7 = scmp.ge.s32.totalorder %s2593_s16, 2  ;;  %s1724_s12 = sand.u32 1, %s2581_s13  }
 0x3cf   : > { %s1725_s20 = scalar_lea.sflag [#allocation3], %s1724_s12 }
 0x3d0   : > { %p2458_p8 = pnand %p2464_p7, %p2696_p6 }
 0x3d2   : > { %2572 = dma.done.wait (!%p2458_p8), %s1725_s20, 4096  }
 0x3d3   : > { %2574 = vsyncadd (!%p2458_p8), %s1725_s20, 4294963200  ;;  %s1734_s23 = scalar_lea.sflag [#allocation5], %s1724_s12 }
 0x3d4   : > { %2576 = dma.done.wait (!%p2458_p8), %s1734_s23, 4096  }
 0x3d5   : > { %2578 = vsyncadd (!%p2458_p8), %s1734_s23, 4294963200  ;;  %p24_p5 = scmp.ge.s32.totalorder %s2679_s19, 4   ;;  %s3296_s13 = smov %s2585_s14 }
 0x3d6   : > { %s3297_s14 = smov %s2589_s15  ;;  %s3298_s15 = smov %s2690_s22 }
 0x3d7   : > { %s3299_s16 = smov %s2679_s19  ;;  %26 = sbr.rel (!%p24_p5) target bundleno = 5 (0x5), region = 108 }
 0x3de   :  { %1739 = vsyncpa [#allocation3], 1 }
 0x3df   :  { %1741 = vsyncpa [#allocation3 + $0x1], 1 }
 0x3e0   :  { %1742 = vsyncpa [#allocation5], 1 }
 0x3e1   :  { %1744 = vsyncpa [#allocation5 + $0x1], 1 }

</bundles_post_ra>
